<compile_context>
chip_gen: v7x
topology: tpu7x:2x2x1
jax: 0.10.0
libtpu: 0.0.40
codegen_flags: <defaults>
</compile_context>

<pallas_src>
import math
import functools

import jax
import jax.numpy as jnp
import numpy as np
from jax.experimental import pallas as pl
from jax.experimental.pallas import tpu as pltpu


def clip_layer_kernel(x_ref,
                      ln1_g_ref, ln1_b_ref,
                      wqkv_ref, bqkv_ref,
                      wo_ref, bo_ref,
                      ln2_g_ref, ln2_b_ref,
                      w1_ref, b1_ref,
                      w2_ref, b2_ref,
                      o_ref,
                      *, n_head):
    Bt, S, D = x_ref.shape
    H = n_head
    dh = D // H
    eps = jnp.float32(1e-5)
    wdt = wqkv_ref.dtype                         # MXU operand dtype (f32 or bf16)
    # transcendental dtype: bf16 EUP only when already running bf16 operands
    # (v6e/v7x production config); v5e path (f32 operands) stays f32.
    edt = jnp.bfloat16 if wdt == jnp.bfloat16 else jnp.float32

    x = x_ref[...].astype(jnp.float32).reshape(Bt * S, D)     # (Bt*S, D)

    def layernorm(v, g_ref, b_ref):
        # single-pass variance: E[x^2] - mu^2
        mu = jnp.mean(v, axis=-1, keepdims=True)
        ms = jnp.mean(v * v, axis=-1, keepdims=True)
        var = ms - mu * mu
        return (v - mu) * jax.lax.rsqrt(var + eps) * g_ref[...] + b_ref[...]

    # ---- attention block -------------------------------------------------
    residue = x
    h = layernorm(x, ln1_g_ref, ln1_b_ref)

    # Fused QKV projection; 1/sqrt(dh) pre-folded into the Q columns/bias.
    qkv = (jnp.dot(h.astype(wdt), wqkv_ref[...],
                   preferred_element_type=jnp.float32)
           + bqkv_ref[...])                                    # (Bt*S, 3D) f32
    qkv = qkv.reshape(Bt, S, 3 * D)

    # Head-major batched views (H*Bt, S, dh) via lane slices + leading-dim concat
    # (avoids a 4-D transpose; one batched einsum then covers every head/sequence).
    def heads(col0):
        parts = [qkv[:, :, col0 + hh * dh: col0 + (hh + 1) * dh] for hh in range(H)]
        return parts[0] if H == 1 else jnp.concatenate(parts, axis=0)

    q = heads(0).astype(wdt)
    k = heads(D).astype(wdt)
    v = heads(2 * D).astype(wdt)

    # causal mask (strictly upper triangular), matching masked_fill(triu(1), -inf);
    # large finite negative keeps exp() NaN-safe even for fully masked rows.
    row = jax.lax.broadcasted_iota(jnp.int32, (S, S), 0)
    col = jax.lax.broadcasted_iota(jnp.int32, (S, S), 1)
    causal = (col > row)[None]                                 # (1, S, S)
    neg = jnp.float32(-1e30)

    scores = jnp.einsum('bqd,bkd->bqk', q, k,
                        preferred_element_type=jnp.float32)    # (H*Bt, S, S)
    scores = jnp.where(causal, neg, scores)
    m = jnp.max(scores, axis=-1, keepdims=True)
    e = jnp.exp((scores - m).astype(edt))                      # bf16 EUP on v6e/v7x cfg
    denom = jnp.sum(e.astype(jnp.float32), axis=-1, keepdims=True)   # row-sum in f32
    p = (e * pl.reciprocal(denom, approx=True)).astype(wdt)
    o_h = jnp.einsum('bqk,bkd->bqd', p, v,
                     preferred_element_type=jnp.float32)       # (H*Bt, S, dh)

    # back to (Bt*S, D): per-head leading-dim slice -> lane concat
    cols = [o_h[hh * Bt:(hh + 1) * Bt].reshape(Bt * S, dh) for hh in range(H)]
    attn = cols[0] if H == 1 else jnp.concatenate(cols, axis=-1)

    attn = (jnp.dot(attn.astype(wdt), wo_ref[...],
                    preferred_element_type=jnp.float32) + bo_ref[...])
    x2 = attn + residue

    # ---- MLP block (QuickGELU) --------------------------------------------
    # TODO(synk): for D >= ~1024 on v7x (64 MiB VMEM), stream w1/w2 over a
    # K-reduction grid axis instead of keeping them fully resident.
    residue = x2
    h2 = layernorm(x2, ln2_g_ref, ln2_b_ref)
    h2 = (jnp.dot(h2.astype(wdt), w1_ref[...],
                  preferred_element_type=jnp.float32) + b1_ref[...])      # (Bt*S, 4D)
    z = (jnp.float32(1.702) * h2).astype(edt)
    gate = 1.0 / (1.0 + jnp.exp(-z).astype(jnp.float32))       # sigmoid, exp in edt
    h2 = h2 * gate
    h2 = (jnp.dot(h2.astype(wdt), w2_ref[...],
                  preferred_element_type=jnp.float32) + b2_ref[...])

    o_ref[...] = (h2 + residue).reshape(Bt, S, D).astype(o_ref.dtype)


def _prep_params(params, n_head, compute_dtype):
    """Fold 1/sqrt(dh) into Q, cast weight matrices, lift 1-D params to (1, N)."""
    ln1_g, ln1_b, wqkv, bqkv, wo, bo, ln2_g, ln2_b, w1, b1, w2, b2 = params
    D = wo.shape[0]
    dh = D // n_head
    scale = jnp.float32(1.0 / math.sqrt(dh))

    wqkv = wqkv.at[:, :D].multiply(scale).astype(compute_dtype)
    bqkv = bqkv.at[:D].multiply(scale)
    wo = wo.astype(compute_dtype)
    w1 = w1.astype(compute_dtype)
    w2 = w2.astype(compute_dtype)

    def row(v):
        return v.reshape(1, -1).astype(jnp.float32)

    return (row(ln1_g), row(ln1_b), wqkv, row(bqkv), wo, row(bo),
            row(ln2_g), row(ln2_b), w1, row(b1), w2, row(b2))


def _pick_block_b(B, S):
    divisors = [d for d in range(1, B + 1) if B % d == 0]
    # keep >= 2 grid steps when possible (v7x has 2 TensorCores sharding the
    # 'parallel' axis); then grow block_b*S toward MXU M-fill, capped ~512 rows
    # so the (H*block_b, S, S) score tensors stay modest.
    cands = [d for d in divisors if B // d >= 2] or divisors
    best = cands[0]
    for d in cands:
        if d * S <= 512:
            best = max(best, d)
    return best


def _vmem_limit_bytes(block_b, S, D, n_head, x_itemsize, w_itemsize, weight_bufs):
    M = block_b * S
    weight_bytes = weight_bufs * (12 * D * D) * w_itemsize            # qkv + wo + w1 + w2
    bias_bytes = 2 * (8 * D + 8 * D) * 4                              # small, generous
    io_bytes = 2 * 2 * M * D * x_itemsize                             # x & o, double-buffered
    act_bytes = (M * D * 4 * 6                                        # x, h, attn, residuals
                 + M * 3 * D * 4 * 2                                  # qkv + head-major copies
                 + M * 4 * D * 4 * 2                                  # MLP hidden live copies
                 + block_b * n_head * S * S * 4 * 3)                  # scores / e / p
    need = weight_bytes + bias_bytes + io_bytes + act_bytes + (4 << 20)

    # generation-aware cap: ~85% of capacity / capacity - 8 MiB headroom
    try:
        cap = int(pltpu.get_tpu_info().vmem_capacity_bytes)
    except Exception:
        cap = 64 << 20                                                # conservative (v7x-sized)
    safe_cap = min(cap - (8 << 20), (cap * 85) // 100)
    return int(min(max(need, 16 << 20), max(safe_cap, 16 << 20)))


def clip_layer(x, params, n_head, *, block_b=None, compute_dtype=jnp.float32):
    B, S, D = x.shape
    assert D % n_head == 0
    if block_b is None:
        block_b = _pick_block_b(B, S)
    assert B % block_b == 0

    prepped = _prep_params(params, n_head, compute_dtype)
    w_itemsize = jnp.dtype(compute_dtype).itemsize
    x_itemsize = jnp.dtype(x.dtype).itemsize

    x_spec = pl.BlockSpec((block_b, S, D), lambda b: (b, 0, 0))
    out_spec = pl.BlockSpec((block_b, S, D), lambda b: (b, 0, 0))

    def build(single_buffer_weights):
        if single_buffer_weights:
            # grid-invariant weights: 1-deep buffering (default double-buffer is waste)
            pm = pl.Buffered(1)
            param_specs = [pl.BlockSpec(p.shape, lambda b: (0, 0), pipeline_mode=pm)
                           for p in prepped]
            wbufs = 1
        else:
            param_specs = [pl.BlockSpec(p.shape, lambda b: (0, 0)) for p in prepped]
            wbufs = 2

        vmem_limit = _vmem_limit_bytes(block_b, S, D, n_head,
                                       x_itemsize, w_itemsize, wbufs)
        return pl.pallas_call(
            functools.partial(clip_layer_kernel, n_head=n_head),
            out_shape=jax.ShapeDtypeStruct((B, S, D), x.dtype),
            grid_spec=pltpu.PrefetchScalarGridSpec(
                num_scalar_prefetch=0,
                grid=(B // block_b,),
                in_specs=[x_spec] + param_specs,
                out_specs=out_spec,
            ),
            compiler_params=pltpu.CompilerParams(
                dimension_semantics=("parallel",),
                vmem_limit_bytes=vmem_limit,
            ),
        )

    try:
        out = build(True)(x, *prepped)
        return jax.block_until_ready(out)
    except Exception:
        # Fallback if this JAX version rejects Buffered(1) pipeline mode.
        out = build(False)(x, *prepped)
        return jax.block_until_ready(out)


def ref_clip_layer(x, params, n_head):
    """Pure-JAX reference mirroring the PyTorch forward pass (all f32)."""
    (ln1_g, ln1_b, wqkv, bqkv, wo, bo, ln2_g, ln2_b, w1, b1, w2, b2) = params
    B, S, D = x.shape
    dh = D // n_head

    def ln(v, g, b):
        mu = v.mean(-1, keepdims=True)
        var = ((v - mu) ** 2).mean(-1, keepdims=True)
        return (v - mu) / jnp.sqrt(var + 1e-5) * g + b

    residue = x
    h = ln(x, ln1_g, ln1_b)
    qkv = h @ wqkv + bqkv
    q, k, v = jnp.split(qkv, 3, axis=-1)
    q = q.reshape(B, S, n_head, dh).transpose(0, 2, 1, 3)
    k = k.reshape(B, S, n_head, dh).transpose(0, 2, 1, 3)
    v = v.reshape(B, S, n_head, dh).transpose(0, 2, 1, 3)
    scores = jnp.einsum('bhqd,bhkd->bhqk', q, k)
    mask = jnp.triu(jnp.ones((S, S), dtype=bool), k=1)
    scores = jnp.where(mask, -jnp.inf, scores)
    scores = scores / math.sqrt(dh)
    scores = jax.nn.softmax(scores, axis=-1)
    attn = jnp.einsum('bhqk,bhkd->bhqd', scores, v)
    attn = attn.transpose(0, 2, 1, 3).reshape(B, S, D)
    attn = attn @ wo + bo
    x = attn + residue

    residue = x
    h = ln(x, ln2_g, ln2_b)
    h = h @ w1 + b1
    h = h * jax.nn.sigmoid(1.702 * h)
    h = h @ w2 + b2
    return h + residue


def init_params(key, n_embd):
    D = n_embd
    ks = jax.random.split(key, 6)
    scale = 0.05
    ln1_g = jnp.ones((D,), jnp.float32)
    ln1_b = jnp.zeros((D,), jnp.float32)
    wqkv = scale * jax.random.normal(ks[0], (D, 3 * D), jnp.float32)
    bqkv = scale * jax.random.normal(ks[1], (3 * D,), jnp.float32)
    wo = scale * jax.random.normal(ks[2], (D, D), jnp.float32)
    bo = scale * jax.random.normal(ks[3], (D,), jnp.float32)
    ln2_g = jnp.ones((D,), jnp.float32)
    ln2_b = jnp.zeros((D,), jnp.float32)
    w1 = scale * jax.random.normal(ks[4], (D, 4 * D), jnp.float32)
    b1 = jnp.zeros((4 * D,), jnp.float32)
    w2 = scale * jax.random.normal(ks[5], (4 * D, D), jnp.float32)
    b2 = jnp.zeros((D,), jnp.float32)
    return (ln1_g, ln1_b, wqkv, bqkv, wo, bo, ln2_g, ln2_b, w1, b1, w2, b2)


if __name__ == "__main__":
    B, S, D, H = 2, 16, 64, 4
    key = jax.random.PRNGKey(0)
    kx, kp = jax.random.split(key)
    x = jax.random.normal(kx, (B, S, D), jnp.float32)
    params = init_params(kp, D)

    ref = jax.block_until_ready(ref_clip_layer(x, params, n_head=H))

    # f32 MXU operands: tight check (only deviation is the approx softmax reciprocal).
    out_f32 = clip_layer(x, params, H, compute_dtype=jnp.float32)
    np.testing.assert_allclose(np.asarray(out_f32), np.asarray(ref), rtol=5e-3, atol=5e-3)

    # bf16 MXU operands + bf16 exp/sigmoid, f32 accumulation (v6e/v7x config).
    out_bf16 = clip_layer(x, params, H, compute_dtype=jnp.bfloat16)
    np.testing.assert_allclose(np.asarray(out_bf16), np.asarray(ref), rtol=5e-2, atol=5e-2)

    print("KERNEL_OK")
</pallas_src>

<mosaic_0001>
module attributes {stable_mosaic.version = 11 : i64} {
  func.func @clip_layer_kernel(%arg0: i32, %arg1: memref<1x16x64xf32, #tpu.memory_space<vmem>>, %arg2: memref<1x64xf32, #tpu.memory_space<vmem>>, %arg3: memref<1x64xf32, #tpu.memory_space<vmem>>, %arg4: memref<64x192xf32, #tpu.memory_space<vmem>>, %arg5: memref<1x192xf32, #tpu.memory_space<vmem>>, %arg6: memref<64x64xf32, #tpu.memory_space<vmem>>, %arg7: memref<1x64xf32, #tpu.memory_space<vmem>>, %arg8: memref<1x64xf32, #tpu.memory_space<vmem>>, %arg9: memref<1x64xf32, #tpu.memory_space<vmem>>, %arg10: memref<64x256xf32, #tpu.memory_space<vmem>>, %arg11: memref<1x256xf32, #tpu.memory_space<vmem>>, %arg12: memref<256x64xf32, #tpu.memory_space<vmem>>, %arg13: memref<1x64xf32, #tpu.memory_space<vmem>>, %arg14: memref<1x16x64xf32, #tpu.memory_space<vmem>>) attributes {dimension_semantics = [#tpu.dimension_semantics<parallel>], iteration_bounds = array<i64: 2>, scalar_prefetch = 0 : i64, scratch_operands = 0 : i64, tpu.core_type = #tpu.core_type<tc>, window_params = [{transform_indices = @transform_0, window_bounds = array<i64: 1, 16, 64>}, {pipeline_mode = #tpu.pipeline_mode<synchronous>, transform_indices = @transform_1, window_bounds = array<i64: 1, 64>}, {pipeline_mode = #tpu.pipeline_mode<synchronous>, transform_indices = @transform_2, window_bounds = array<i64: 1, 64>}, {pipeline_mode = #tpu.pipeline_mode<synchronous>, transform_indices = @transform_3, window_bounds = array<i64: 64, 192>}, {pipeline_mode = #tpu.pipeline_mode<synchronous>, transform_indices = @transform_4, window_bounds = array<i64: 1, 192>}, {pipeline_mode = #tpu.pipeline_mode<synchronous>, transform_indices = @transform_5, window_bounds = array<i64: 64, 64>}, {pipeline_mode = #tpu.pipeline_mode<synchronous>, transform_indices = @transform_6, window_bounds = array<i64: 1, 64>}, {pipeline_mode = #tpu.pipeline_mode<synchronous>, transform_indices = @transform_7, window_bounds = array<i64: 1, 64>}, {pipeline_mode = #tpu.pipeline_mode<synchronous>, transform_indices = @transform_8, window_bounds = array<i64: 1, 64>}, {pipeline_mode = #tpu.pipeline_mode<synchronous>, transform_indices = @transform_9, window_bounds = array<i64: 64, 256>}, {pipeline_mode = #tpu.pipeline_mode<synchronous>, transform_indices = @transform_10, window_bounds = array<i64: 1, 256>}, {pipeline_mode = #tpu.pipeline_mode<synchronous>, transform_indices = @transform_11, window_bounds = array<i64: 256, 64>}, {pipeline_mode = #tpu.pipeline_mode<synchronous>, transform_indices = @transform_12, window_bounds = array<i64: 1, 64>}, {transform_indices = @transform_13, window_bounds = array<i64: 1, 16, 64>}]} {
    %c0 = arith.constant 0 : index
    %c0_0 = arith.constant 0 : index
    %c0_1 = arith.constant 0 : index
    %0 = vector.load %arg1[%c0, %c0_0, %c0_1] : memref<1x16x64xf32, #tpu.memory_space<vmem>>, vector<1x16x64xf32>
    %1 = vector.shape_cast %0 : vector<1x16x64xf32> to vector<16x64xf32>
    %cst = arith.constant dense<0.000000e+00> : vector<16xf32>
    %2 = vector.multi_reduction <add>, %1, %cst [1] : vector<16x64xf32> to vector<16xf32>
    %3 = vector.shape_cast %2 : vector<16xf32> to vector<16x1xf32>
    %cst_2 = arith.constant 6.400000e+01 : f32
    %4 = vector.broadcast %cst_2 : f32 to vector<16x1xf32>
    %5 = arith.divf %3, %4 : vector<16x1xf32>
    %6 = arith.mulf %1, %1 : vector<16x64xf32>
    %cst_3 = arith.constant dense<0.000000e+00> : vector<16xf32>
    %7 = vector.multi_reduction <add>, %6, %cst_3 [1] : vector<16x64xf32> to vector<16xf32>
    %8 = vector.shape_cast %7 : vector<16xf32> to vector<16x1xf32>
    %cst_4 = arith.constant 6.400000e+01 : f32
    %9 = vector.broadcast %cst_4 : f32 to vector<16x1xf32>
    %10 = arith.divf %8, %9 : vector<16x1xf32>
    %11 = arith.mulf %5, %5 : vector<16x1xf32>
    %12 = arith.subf %10, %11 : vector<16x1xf32>
    %13 = vector.broadcast %5 : vector<16x1xf32> to vector<16x64xf32>
    %14 = arith.subf %1, %13 : vector<16x64xf32>
    %cst_5 = arith.constant 9.99999974E-6 : f32
    %15 = vector.broadcast %cst_5 : f32 to vector<16x1xf32>
    %16 = arith.addf %12, %15 : vector<16x1xf32>
    %17 = math.rsqrt %16 : vector<16x1xf32>
    %18 = vector.broadcast %17 : vector<16x1xf32> to vector<16x64xf32>
    %19 = arith.mulf %14, %18 : vector<16x64xf32>
    %c0_6 = arith.constant 0 : index
    %c0_7 = arith.constant 0 : index
    %20 = vector.load %arg2[%c0_6, %c0_7] : memref<1x64xf32, #tpu.memory_space<vmem>>, vector<1x64xf32>
    %21 = vector.broadcast %20 : vector<1x64xf32> to vector<16x64xf32>
    %22 = arith.mulf %19, %21 : vector<16x64xf32>
    %c0_8 = arith.constant 0 : index
    %c0_9 = arith.constant 0 : index
    %23 = vector.load %arg3[%c0_8, %c0_9] : memref<1x64xf32, #tpu.memory_space<vmem>>, vector<1x64xf32>
    %24 = vector.broadcast %23 : vector<1x64xf32> to vector<16x64xf32>
    %25 = arith.addf %22, %24 : vector<16x64xf32>
    %c0_10 = arith.constant 0 : index
    %c0_11 = arith.constant 0 : index
    %26 = vector.load %arg4[%c0_10, %c0_11] : memref<64x192xf32, #tpu.memory_space<vmem>>, vector<64x192xf32>
    %cst_12 = arith.constant dense<0.000000e+00> : vector<16x192xf32>
    %27 = tpu.matmul %25, %26, %cst_12 {dimension_numbers = #tpu.dot_dimension_numbers<[1], [0], [0], [1], [0, 0, 1, 1], [], []>} : vector<16x64xf32>, vector<64x192xf32>, vector<16x192xf32> -> vector<16x192xf32>
    %c0_13 = arith.constant 0 : index
    %c0_14 = arith.constant 0 : index
    %28 = vector.load %arg5[%c0_13, %c0_14] : memref<1x192xf32, #tpu.memory_space<vmem>>, vector<1x192xf32>
    %29 = vector.broadcast %28 : vector<1x192xf32> to vector<16x192xf32>
    %30 = arith.addf %27, %29 : vector<16x192xf32>
    %31 = vector.shape_cast %30 : vector<16x192xf32> to vector<1x16x192xf32>
    %32 = vector.extract_strided_slice %31 {offsets = [0, 0, 0], sizes = [1, 16, 16], strides = [1, 1, 1]} : vector<1x16x192xf32> to vector<1x16x16xf32>
    %33 = vector.extract_strided_slice %31 {offsets = [0, 0, 16], sizes = [1, 16, 16], strides = [1, 1, 1]} : vector<1x16x192xf32> to vector<1x16x16xf32>
    %34 = vector.extract_strided_slice %31 {offsets = [0, 0, 32], sizes = [1, 16, 16], strides = [1, 1, 1]} : vector<1x16x192xf32> to vector<1x16x16xf32>
    %35 = vector.extract_strided_slice %31 {offsets = [0, 0, 48], sizes = [1, 16, 16], strides = [1, 1, 1]} : vector<1x16x192xf32> to vector<1x16x16xf32>
    %36 = tpu.concatenate %32, %33, %34, %35 in 0 : vector<1x16x16xf32>, vector<1x16x16xf32>, vector<1x16x16xf32>, vector<1x16x16xf32> -> vector<4x16x16xf32>
    %37 = vector.extract_strided_slice %31 {offsets = [0, 0, 64], sizes = [1, 16, 16], strides = [1, 1, 1]} : vector<1x16x192xf32> to vector<1x16x16xf32>
    %38 = vector.extract_strided_slice %31 {offsets = [0, 0, 80], sizes = [1, 16, 16], strides = [1, 1, 1]} : vector<1x16x192xf32> to vector<1x16x16xf32>
    %39 = vector.extract_strided_slice %31 {offsets = [0, 0, 96], sizes = [1, 16, 16], strides = [1, 1, 1]} : vector<1x16x192xf32> to vector<1x16x16xf32>
    %40 = vector.extract_strided_slice %31 {offsets = [0, 0, 112], sizes = [1, 16, 16], strides = [1, 1, 1]} : vector<1x16x192xf32> to vector<1x16x16xf32>
    %41 = tpu.concatenate %37, %38, %39, %40 in 0 : vector<1x16x16xf32>, vector<1x16x16xf32>, vector<1x16x16xf32>, vector<1x16x16xf32> -> vector<4x16x16xf32>
    %42 = vector.extract_strided_slice %31 {offsets = [0, 0, 128], sizes = [1, 16, 16], strides = [1, 1, 1]} : vector<1x16x192xf32> to vector<1x16x16xf32>
    %43 = vector.extract_strided_slice %31 {offsets = [0, 0, 144], sizes = [1, 16, 16], strides = [1, 1, 1]} : vector<1x16x192xf32> to vector<1x16x16xf32>
    %44 = vector.extract_strided_slice %31 {offsets = [0, 0, 160], sizes = [1, 16, 16], strides = [1, 1, 1]} : vector<1x16x192xf32> to vector<1x16x16xf32>
    %45 = vector.extract_strided_slice %31 {offsets = [0, 0, 176], sizes = [1, 16, 16], strides = [1, 1, 1]} : vector<1x16x192xf32> to vector<1x16x16xf32>
    %46 = tpu.concatenate %42, %43, %44, %45 in 0 : vector<1x16x16xf32>, vector<1x16x16xf32>, vector<1x16x16xf32>, vector<1x16x16xf32> -> vector<4x16x16xf32>
    %47 = tpu.iota {dimensions = array<i32: 0>} : vector<16x16xi32>
    %48 = tpu.iota {dimensions = array<i32: 1>} : vector<16x16xi32>
    %49 = arith.cmpi sgt, %48, %47 : vector<16x16xi32>
    %50 = vector.shape_cast %49 : vector<16x16xi1> to vector<1x16x16xi1>
    "tpu.trace_start"() <{level = 10 : i32, message = "bqd,bkd->bqk"}> : () -> ()
    %cst_15 = arith.constant dense<0.000000e+00> : vector<4x16x16xf32>
    %51 = tpu.matmul %36, %41, %cst_15 {dimension_numbers = #tpu.dot_dimension_numbers<[2], [2], [1], [1], [0, 0, 0, 1, 1, 1], [0], [0]>} : vector<4x16x16xf32>, vector<4x16x16xf32>, vector<4x16x16xf32> -> vector<4x16x16xf32>
    %cst_16 = arith.constant -1.000000e+30 : f32
    "tpu.trace_stop"() : () -> ()
    %52 = vector.shape_cast %50 : vector<1x16x16xi1> to vector<1x16x16xi1>
    %53 = vector.broadcast %52 : vector<1x16x16xi1> to vector<4x16x16xi1>
    %54 = vector.broadcast %cst_16 : f32 to vector<4x16x16xf32>
    %55 = arith.select %53, %54, %51 : vector<4x16x16xi1>, vector<4x16x16xf32>
    %cst_17 = arith.constant dense<0xFF800000> : vector<4x16xf32>
    %56 = vector.multi_reduction <maximumf>, %55, %cst_17 [2] : vector<4x16x16xf32> to vector<4x16xf32>
    %57 = vector.shape_cast %56 : vector<4x16xf32> to vector<4x16x1xf32>
    %58 = vector.broadcast %57 : vector<4x16x1xf32> to vector<4x16x16xf32>
    %59 = arith.subf %55, %58 : vector<4x16x16xf32>
    %60 = math.exp %59 : vector<4x16x16xf32>
    %cst_18 = arith.constant dense<0.000000e+00> : vector<4x16xf32>
    %61 = vector.multi_reduction <add>, %60, %cst_18 [2] : vector<4x16x16xf32> to vector<4x16xf32>
    %62 = vector.shape_cast %61 : vector<4x16xf32> to vector<4x16x1xf32>
    %63 = tpu.reciprocal %62 {approx = true} : vector<4x16x1xf32> -> vector<4x16x1xf32>
    %64 = vector.broadcast %63 : vector<4x16x1xf32> to vector<4x16x16xf32>
    %65 = arith.mulf %60, %64 : vector<4x16x16xf32>
    "tpu.trace_start"() <{level = 10 : i32, message = "bqk,bkd->bqd"}> : () -> ()
    %cst_19 = arith.constant dense<0.000000e+00> : vector<4x16x16xf32>
    %66 = tpu.matmul %65, %46, %cst_19 {dimension_numbers = #tpu.dot_dimension_numbers<[2], [1], [1], [2], [0, 0, 0, 1, 1, 2], [0], [0]>} : vector<4x16x16xf32>, vector<4x16x16xf32>, vector<4x16x16xf32> -> vector<4x16x16xf32>
    "tpu.trace_stop"() : () -> ()
    %67 = vector.extract_strided_slice %66 {offsets = [0, 0, 0], sizes = [1, 16, 16], strides = [1, 1, 1]} : vector<4x16x16xf32> to vector<1x16x16xf32>
    %68 = vector.shape_cast %67 : vector<1x16x16xf32> to vector<16x16xf32>
    %69 = vector.extract_strided_slice %66 {offsets = [1, 0, 0], sizes = [1, 16, 16], strides = [1, 1, 1]} : vector<4x16x16xf32> to vector<1x16x16xf32>
    %70 = vector.shape_cast %69 : vector<1x16x16xf32> to vector<16x16xf32>
    %71 = vector.extract_strided_slice %66 {offsets = [2, 0, 0], sizes = [1, 16, 16], strides = [1, 1, 1]} : vector<4x16x16xf32> to vector<1x16x16xf32>
    %72 = vector.shape_cast %71 : vector<1x16x16xf32> to vector<16x16xf32>
    %73 = vector.extract_strided_slice %66 {offsets = [3, 0, 0], sizes = [1, 16, 16], strides = [1, 1, 1]} : vector<4x16x16xf32> to vector<1x16x16xf32>
    %74 = vector.shape_cast %73 : vector<1x16x16xf32> to vector<16x16xf32>
    %75 = tpu.concatenate %68, %70, %72, %74 in 1 : vector<16x16xf32>, vector<16x16xf32>, vector<16x16xf32>, vector<16x16xf32> -> vector<16x64xf32>
    %c0_20 = arith.constant 0 : index
    %c0_21 = arith.constant 0 : index
    %76 = vector.load %arg6[%c0_20, %c0_21] : memref<64x64xf32, #tpu.memory_space<vmem>>, vector<64x64xf32>
    %cst_22 = arith.constant dense<0.000000e+00> : vector<16x64xf32>
    %77 = tpu.matmul %75, %76, %cst_22 {dimension_numbers = #tpu.dot_dimension_numbers<[1], [0], [0], [1], [0, 0, 1, 1], [], []>} : vector<16x64xf32>, vector<64x64xf32>, vector<16x64xf32> -> vector<16x64xf32>
    %c0_23 = arith.constant 0 : index
    %c0_24 = arith.constant 0 : index
    %78 = vector.load %arg7[%c0_23, %c0_24] : memref<1x64xf32, #tpu.memory_space<vmem>>, vector<1x64xf32>
    %79 = vector.broadcast %78 : vector<1x64xf32> to vector<16x64xf32>
    %80 = arith.addf %77, %79 : vector<16x64xf32>
    %81 = arith.addf %80, %1 : vector<16x64xf32>
    %cst_25 = arith.constant dense<0.000000e+00> : vector<16xf32>
    %82 = vector.multi_reduction <add>, %81, %cst_25 [1] : vector<16x64xf32> to vector<16xf32>
    %83 = vector.shape_cast %82 : vector<16xf32> to vector<16x1xf32>
    %cst_26 = arith.constant 6.400000e+01 : f32
    %84 = vector.broadcast %cst_26 : f32 to vector<16x1xf32>
    %85 = arith.divf %83, %84 : vector<16x1xf32>
    %86 = arith.mulf %81, %81 : vector<16x64xf32>
    %cst_27 = arith.constant dense<0.000000e+00> : vector<16xf32>
    %87 = vector.multi_reduction <add>, %86, %cst_27 [1] : vector<16x64xf32> to vector<16xf32>
    %88 = vector.shape_cast %87 : vector<16xf32> to vector<16x1xf32>
    %cst_28 = arith.constant 6.400000e+01 : f32
    %89 = vector.broadcast %cst_28 : f32 to vector<16x1xf32>
    %90 = arith.divf %88, %89 : vector<16x1xf32>
    %91 = arith.mulf %85, %85 : vector<16x1xf32>
    %92 = arith.subf %90, %91 : vector<16x1xf32>
    %93 = vector.broadcast %85 : vector<16x1xf32> to vector<16x64xf32>
    %94 = arith.subf %81, %93 : vector<16x64xf32>
    %cst_29 = arith.constant 9.99999974E-6 : f32
    %95 = vector.broadcast %cst_29 : f32 to vector<16x1xf32>
    %96 = arith.addf %92, %95 : vector<16x1xf32>
    %97 = math.rsqrt %96 : vector<16x1xf32>
    %98 = vector.broadcast %97 : vector<16x1xf32> to vector<16x64xf32>
    %99 = arith.mulf %94, %98 : vector<16x64xf32>
    %c0_30 = arith.constant 0 : index
    %c0_31 = arith.constant 0 : index
    %100 = vector.load %arg8[%c0_30, %c0_31] : memref<1x64xf32, #tpu.memory_space<vmem>>, vector<1x64xf32>
    %101 = vector.broadcast %100 : vector<1x64xf32> to vector<16x64xf32>
    %102 = arith.mulf %99, %101 : vector<16x64xf32>
    %c0_32 = arith.constant 0 : index
    %c0_33 = arith.constant 0 : index
    %103 = vector.load %arg9[%c0_32, %c0_33] : memref<1x64xf32, #tpu.memory_space<vmem>>, vector<1x64xf32>
    %104 = vector.broadcast %103 : vector<1x64xf32> to vector<16x64xf32>
    %105 = arith.addf %102, %104 : vector<16x64xf32>
    %c0_34 = arith.constant 0 : index
    %c0_35 = arith.constant 0 : index
    %106 = vector.load %arg10[%c0_34, %c0_35] : memref<64x256xf32, #tpu.memory_space<vmem>>, vector<64x256xf32>
    %cst_36 = arith.constant dense<0.000000e+00> : vector<16x256xf32>
    %107 = tpu.matmul %105, %106, %cst_36 {dimension_numbers = #tpu.dot_dimension_numbers<[1], [0], [0], [1], [0, 0, 1, 1], [], []>} : vector<16x64xf32>, vector<64x256xf32>, vector<16x256xf32> -> vector<16x256xf32>
    %c0_37 = arith.constant 0 : index
    %c0_38 = arith.constant 0 : index
    %108 = vector.load %arg11[%c0_37, %c0_38] : memref<1x256xf32, #tpu.memory_space<vmem>>, vector<1x256xf32>
    %109 = vector.broadcast %108 : vector<1x256xf32> to vector<16x256xf32>
    %110 = arith.addf %107, %109 : vector<16x256xf32>
    %cst_39 = arith.constant 1.702000e+00 : f32
    %111 = vector.broadcast %cst_39 : f32 to vector<16x256xf32>
    %112 = arith.mulf %111, %110 : vector<16x256xf32>
    %cst_40 = arith.constant 0.000000e+00 : f32
    %113 = vector.broadcast %cst_40 : f32 to vector<16x256xf32>
    %114 = arith.subf %113, %112 : vector<16x256xf32>
    %115 = math.exp %114 : vector<16x256xf32>
    %cst_41 = arith.constant 1.000000e+00 : f32
    %116 = vector.broadcast %cst_41 : f32 to vector<16x256xf32>
    %117 = arith.addf %116, %115 : vector<16x256xf32>
    %cst_42 = arith.constant 1.000000e+00 : f32
    %118 = vector.broadcast %cst_42 : f32 to vector<16x256xf32>
    %119 = arith.divf %118, %117 : vector<16x256xf32>
    %120 = arith.mulf %110, %119 : vector<16x256xf32>
    %c0_43 = arith.constant 0 : index
    %c0_44 = arith.constant 0 : index
    %121 = vector.load %arg12[%c0_43, %c0_44] : memref<256x64xf32, #tpu.memory_space<vmem>>, vector<256x64xf32>
    %cst_45 = arith.constant dense<0.000000e+00> : vector<16x64xf32>
    %122 = tpu.matmul %120, %121, %cst_45 {dimension_numbers = #tpu.dot_dimension_numbers<[1], [0], [0], [1], [0, 0, 1, 1], [], []>} : vector<16x256xf32>, vector<256x64xf32>, vector<16x64xf32> -> vector<16x64xf32>
    %c0_46 = arith.constant 0 : index
    %c0_47 = arith.constant 0 : index
    %123 = vector.load %arg13[%c0_46, %c0_47] : memref<1x64xf32, #tpu.memory_space<vmem>>, vector<1x64xf32>
    %124 = vector.broadcast %123 : vector<1x64xf32> to vector<16x64xf32>
    %125 = arith.addf %122, %124 : vector<16x64xf32>
    %126 = arith.addf %125, %81 : vector<16x64xf32>
    %127 = vector.shape_cast %126 : vector<16x64xf32> to vector<1x16x64xf32>
    %c0_48 = arith.constant 0 : index
    %c0_49 = arith.constant 0 : index
    %c0_50 = arith.constant 0 : index
    %128 = vector.load %arg14[%c0_48, %c0_49, %c0_50] : memref<1x16x64xf32, #tpu.memory_space<vmem>>, vector<1x16x64xf32>
    tpu.vector_store %arg14[%c0_48, %c0_49, %c0_50], %127 {strides = array<i32>} : memref<1x16x64xf32, #tpu.memory_space<vmem>>, vector<1x16x64xf32>,
    return
  }
  func.func @transform_0(%arg0: i32) -> (i32, i32, i32) {
    %c0_i32 = arith.constant 0 : i32
    %c0_i32_0 = arith.constant 0 : i32
    %c0_i32_1 = arith.constant 0 : i32
    return %arg0, %c0_i32, %c0_i32_0 : i32, i32, i32
  }
  func.func @transform_1(%arg0: i32) -> (i32, i32) {
    %c0_i32 = arith.constant 0 : i32
    %c0_i32_0 = arith.constant 0 : i32
    %c0_i32_1 = arith.constant 0 : i32
    return %c0_i32, %c0_i32_0 : i32, i32
  }
  func.func @transform_2(%arg0: i32) -> (i32, i32) {
    %c0_i32 = arith.constant 0 : i32
    %c0_i32_0 = arith.constant 0 : i32
    %c0_i32_1 = arith.constant 0 : i32
    return %c0_i32, %c0_i32_0 : i32, i32
  }
  func.func @transform_3(%arg0: i32) -> (i32, i32) {
    %c0_i32 = arith.constant 0 : i32
    %c0_i32_0 = arith.constant 0 : i32
    %c0_i32_1 = arith.constant 0 : i32
    return %c0_i32, %c0_i32_0 : i32, i32
  }
  func.func @transform_4(%arg0: i32) -> (i32, i32) {
    %c0_i32 = arith.constant 0 : i32
    %c0_i32_0 = arith.constant 0 : i32
    %c0_i32_1 = arith.constant 0 : i32
    return %c0_i32, %c0_i32_0 : i32, i32
  }
  func.func @transform_5(%arg0: i32) -> (i32, i32) {
    %c0_i32 = arith.constant 0 : i32
    %c0_i32_0 = arith.constant 0 : i32
    %c0_i32_1 = arith.constant 0 : i32
    return %c0_i32, %c0_i32_0 : i32, i32
  }
  func.func @transform_6(%arg0: i32) -> (i32, i32) {
    %c0_i32 = arith.constant 0 : i32
    %c0_i32_0 = arith.constant 0 : i32
    %c0_i32_1 = arith.constant 0 : i32
    return %c0_i32, %c0_i32_0 : i32, i32
  }
  func.func @transform_7(%arg0: i32) -> (i32, i32) {
    %c0_i32 = arith.constant 0 : i32
    %c0_i32_0 = arith.constant 0 : i32
    %c0_i32_1 = arith.constant 0 : i32
    return %c0_i32, %c0_i32_0 : i32, i32
  }
  func.func @transform_8(%arg0: i32) -> (i32, i32) {
    %c0_i32 = arith.constant 0 : i32
    %c0_i32_0 = arith.constant 0 : i32
    %c0_i32_1 = arith.constant 0 : i32
    return %c0_i32, %c0_i32_0 : i32, i32
  }
  func.func @transform_9(%arg0: i32) -> (i32, i32) {
    %c0_i32 = arith.constant 0 : i32
    %c0_i32_0 = arith.constant 0 : i32
    %c0_i32_1 = arith.constant 0 : i32
    return %c0_i32, %c0_i32_0 : i32, i32
  }
  func.func @transform_10(%arg0: i32) -> (i32, i32) {
    %c0_i32 = arith.constant 0 : i32
    %c0_i32_0 = arith.constant 0 : i32
    %c0_i32_1 = arith.constant 0 : i32
    return %c0_i32, %c0_i32_0 : i32, i32
  }
  func.func @transform_11(%arg0: i32) -> (i32, i32) {
    %c0_i32 = arith.constant 0 : i32
    %c0_i32_0 = arith.constant 0 : i32
    %c0_i32_1 = arith.constant 0 : i32
    return %c0_i32, %c0_i32_0 : i32, i32
  }
  func.func @transform_12(%arg0: i32) -> (i32, i32) {
    %c0_i32 = arith.constant 0 : i32
    %c0_i32_0 = arith.constant 0 : i32
    %c0_i32_1 = arith.constant 0 : i32
    return %c0_i32, %c0_i32_0 : i32, i32
  }
  func.func @transform_13(%arg0: i32) -> (i32, i32, i32) {
    %c0_i32 = arith.constant 0 : i32
    %c0_i32_0 = arith.constant 0 : i32
    %c0_i32_1 = arith.constant 0 : i32
    return %arg0, %c0_i32, %c0_i32_0 : i32, i32, i32
  }
}

module attributes {stable_mosaic.version = 11 : i64} {
  func.func @clip_layer_kernel(%arg0: i32, %arg1: memref<1x16x64xf32, #tpu.memory_space<vmem>>, %arg2: memref<1x64xf32, #tpu.memory_space<vmem>>, %arg3: memref<1x64xf32, #tpu.memory_space<vmem>>, %arg4: memref<64x192xf32, #tpu.memory_space<vmem>>, %arg5: memref<1x192xf32, #tpu.memory_space<vmem>>, %arg6: memref<64x64xf32, #tpu.memory_space<vmem>>, %arg7: memref<1x64xf32, #tpu.memory_space<vmem>>, %arg8: memref<1x64xf32, #tpu.memory_space<vmem>>, %arg9: memref<1x64xf32, #tpu.memory_space<vmem>>, %arg10: memref<64x256xf32, #tpu.memory_space<vmem>>, %arg11: memref<1x256xf32, #tpu.memory_space<vmem>>, %arg12: memref<256x64xf32, #tpu.memory_space<vmem>>, %arg13: memref<1x64xf32, #tpu.memory_space<vmem>>, %arg14: memref<1x16x64xf32, #tpu.memory_space<vmem>>) attributes {dimension_semantics = [#tpu.dimension_semantics<parallel>], iteration_bounds = array<i64: 2>, scalar_prefetch = 0 : i64, scratch_operands = 0 : i64, tpu.core_type = #tpu.core_type<tc>, window_params = [{transform_indices = @transform_0, window_bounds = array<i64: 1, 16, 64>}, {pipeline_mode = #tpu.pipeline_mode<synchronous>, transform_indices = @transform_1, window_bounds = array<i64: 1, 64>}, {pipeline_mode = #tpu.pipeline_mode<synchronous>, transform_indices = @transform_2, window_bounds = array<i64: 1, 64>}, {pipeline_mode = #tpu.pipeline_mode<synchronous>, transform_indices = @transform_3, window_bounds = array<i64: 64, 192>}, {pipeline_mode = #tpu.pipeline_mode<synchronous>, transform_indices = @transform_4, window_bounds = array<i64: 1, 192>}, {pipeline_mode = #tpu.pipeline_mode<synchronous>, transform_indices = @transform_5, window_bounds = array<i64: 64, 64>}, {pipeline_mode = #tpu.pipeline_mode<synchronous>, transform_indices = @transform_6, window_bounds = array<i64: 1, 64>}, {pipeline_mode = #tpu.pipeline_mode<synchronous>, transform_indices = @transform_7, window_bounds = array<i64: 1, 64>}, {pipeline_mode = #tpu.pipeline_mode<synchronous>, transform_indices = @transform_8, window_bounds = array<i64: 1, 64>}, {pipeline_mode = #tpu.pipeline_mode<synchronous>, transform_indices = @transform_9, window_bounds = array<i64: 64, 256>}, {pipeline_mode = #tpu.pipeline_mode<synchronous>, transform_indices = @transform_10, window_bounds = array<i64: 1, 256>}, {pipeline_mode = #tpu.pipeline_mode<synchronous>, transform_indices = @transform_11, window_bounds = array<i64: 256, 64>}, {pipeline_mode = #tpu.pipeline_mode<synchronous>, transform_indices = @transform_12, window_bounds = array<i64: 1, 64>}, {transform_indices = @transform_13, window_bounds = array<i64: 1, 16, 64>}]} {
    %c0 = arith.constant 0 : index
    %c0_0 = arith.constant 0 : index
    %c0_1 = arith.constant 0 : index
    %0 = vector.load %arg1[%c0, %c0_0, %c0_1] : memref<1x16x64xf32, #tpu.memory_space<vmem>>, vector<1x16x64xf32>
    %1 = vector.shape_cast %0 : vector<1x16x64xf32> to vector<16x64xf32>
    %cst = arith.constant dense<0.000000e+00> : vector<16xf32>
    %2 = vector.multi_reduction <add>, %1, %cst [1] : vector<16x64xf32> to vector<16xf32>
    %3 = vector.shape_cast %2 : vector<16xf32> to vector<16x1xf32>
    %cst_2 = arith.constant 6.400000e+01 : f32
    %4 = vector.broadcast %cst_2 : f32 to vector<16x1xf32>
    %5 = arith.divf %3, %4 : vector<16x1xf32>
    %6 = arith.mulf %1, %1 : vector<16x64xf32>
    %cst_3 = arith.constant dense<0.000000e+00> : vector<16xf32>
    %7 = vector.multi_reduction <add>, %6, %cst_3 [1] : vector<16x64xf32> to vector<16xf32>
    %8 = vector.shape_cast %7 : vector<16xf32> to vector<16x1xf32>
    %cst_4 = arith.constant 6.400000e+01 : f32
    %9 = vector.broadcast %cst_4 : f32 to vector<16x1xf32>
    %10 = arith.divf %8, %9 : vector<16x1xf32>
    %11 = arith.mulf %5, %5 : vector<16x1xf32>
    %12 = arith.subf %10, %11 : vector<16x1xf32>
    %13 = vector.broadcast %5 : vector<16x1xf32> to vector<16x64xf32>
    %14 = arith.subf %1, %13 : vector<16x64xf32>
    %cst_5 = arith.constant 9.99999974E-6 : f32
    %15 = vector.broadcast %cst_5 : f32 to vector<16x1xf32>
    %16 = arith.addf %12, %15 : vector<16x1xf32>
    %17 = math.rsqrt %16 : vector<16x1xf32>
    %18 = vector.broadcast %17 : vector<16x1xf32> to vector<16x64xf32>
    %19 = arith.mulf %14, %18 : vector<16x64xf32>
    %c0_6 = arith.constant 0 : index
    %c0_7 = arith.constant 0 : index
    %20 = vector.load %arg2[%c0_6, %c0_7] : memref<1x64xf32, #tpu.memory_space<vmem>>, vector<1x64xf32>
    %21 = vector.broadcast %20 : vector<1x64xf32> to vector<16x64xf32>
    %22 = arith.mulf %19, %21 : vector<16x64xf32>
    %c0_8 = arith.constant 0 : index
    %c0_9 = arith.constant 0 : index
    %23 = vector.load %arg3[%c0_8, %c0_9] : memref<1x64xf32, #tpu.memory_space<vmem>>, vector<1x64xf32>
    %24 = vector.broadcast %23 : vector<1x64xf32> to vector<16x64xf32>
    %25 = arith.addf %22, %24 : vector<16x64xf32>
    %c0_10 = arith.constant 0 : index
    %c0_11 = arith.constant 0 : index
    %26 = vector.load %arg4[%c0_10, %c0_11] : memref<64x192xf32, #tpu.memory_space<vmem>>, vector<64x192xf32>
    %cst_12 = arith.constant dense<0.000000e+00> : vector<16x192xf32>
    %27 = tpu.matmul %25, %26, %cst_12 {dimension_numbers = #tpu.dot_dimension_numbers<[1], [0], [0], [1], [0, 0, 1, 1], [], []>} : vector<16x64xf32>, vector<64x192xf32>, vector<16x192xf32> -> vector<16x192xf32>
    %c0_13 = arith.constant 0 : index
    %c0_14 = arith.constant 0 : index
    %28 = vector.load %arg5[%c0_13, %c0_14] : memref<1x192xf32, #tpu.memory_space<vmem>>, vector<1x192xf32>
    %29 = vector.broadcast %28 : vector<1x192xf32> to vector<16x192xf32>
    %30 = arith.addf %27, %29 : vector<16x192xf32>
    %31 = vector.shape_cast %30 : vector<16x192xf32> to vector<1x16x192xf32>
    %32 = vector.extract_strided_slice %31 {offsets = [0, 0, 0], sizes = [1, 16, 16], strides = [1, 1, 1]} : vector<1x16x192xf32> to vector<1x16x16xf32>
    %33 = vector.extract_strided_slice %31 {offsets = [0, 0, 16], sizes = [1, 16, 16], strides = [1, 1, 1]} : vector<1x16x192xf32> to vector<1x16x16xf32>
    %34 = vector.extract_strided_slice %31 {offsets = [0, 0, 32], sizes = [1, 16, 16], strides = [1, 1, 1]} : vector<1x16x192xf32> to vector<1x16x16xf32>
    %35 = vector.extract_strided_slice %31 {offsets = [0, 0, 48], sizes = [1, 16, 16], strides = [1, 1, 1]} : vector<1x16x192xf32> to vector<1x16x16xf32>
    %36 = tpu.concatenate %32, %33, %34, %35 in 0 : vector<1x16x16xf32>, vector<1x16x16xf32>, vector<1x16x16xf32>, vector<1x16x16xf32> -> vector<4x16x16xf32>
    %37 = vector.extract_strided_slice %31 {offsets = [0, 0, 64], sizes = [1, 16, 16], strides = [1, 1, 1]} : vector<1x16x192xf32> to vector<1x16x16xf32>
    %38 = vector.extract_strided_slice %31 {offsets = [0, 0, 80], sizes = [1, 16, 16], strides = [1, 1, 1]} : vector<1x16x192xf32> to vector<1x16x16xf32>
    %39 = vector.extract_strided_slice %31 {offsets = [0, 0, 96], sizes = [1, 16, 16], strides = [1, 1, 1]} : vector<1x16x192xf32> to vector<1x16x16xf32>
    %40 = vector.extract_strided_slice %31 {offsets = [0, 0, 112], sizes = [1, 16, 16], strides = [1, 1, 1]} : vector<1x16x192xf32> to vector<1x16x16xf32>
    %41 = tpu.concatenate %37, %38, %39, %40 in 0 : vector<1x16x16xf32>, vector<1x16x16xf32>, vector<1x16x16xf32>, vector<1x16x16xf32> -> vector<4x16x16xf32>
    %42 = vector.extract_strided_slice %31 {offsets = [0, 0, 128], sizes = [1, 16, 16], strides = [1, 1, 1]} : vector<1x16x192xf32> to vector<1x16x16xf32>
    %43 = vector.extract_strided_slice %31 {offsets = [0, 0, 144], sizes = [1, 16, 16], strides = [1, 1, 1]} : vector<1x16x192xf32> to vector<1x16x16xf32>
    %44 = vector.extract_strided_slice %31 {offsets = [0, 0, 160], sizes = [1, 16, 16], strides = [1, 1, 1]} : vector<1x16x192xf32> to vector<1x16x16xf32>
    %45 = vector.extract_strided_slice %31 {offsets = [0, 0, 176], sizes = [1, 16, 16], strides = [1, 1, 1]} : vector<1x16x192xf32> to vector<1x16x16xf32>
    %46 = tpu.concatenate %42, %43, %44, %45 in 0 : vector<1x16x16xf32>, vector<1x16x16xf32>, vector<1x16x16xf32>, vector<1x16x16xf32> -> vector<4x16x16xf32>
    %47 = tpu.iota {dimensions = array<i32: 0>} : vector<16x16xi32>
    %48 = tpu.iota {dimensions = array<i32: 1>} : vector<16x16xi32>
    %49 = arith.cmpi sgt, %48, %47 : vector<16x16xi32>
    %50 = vector.shape_cast %49 : vector<16x16xi1> to vector<1x16x16xi1>
    "tpu.trace_start"() <{level = 10 : i32, message = "bqd,bkd->bqk"}> : () -> ()
    %cst_15 = arith.constant dense<0.000000e+00> : vector<4x16x16xf32>
    %51 = tpu.matmul %36, %41, %cst_15 {dimension_numbers = #tpu.dot_dimension_numbers<[2], [2], [1], [1], [0, 0, 0, 1, 1, 1], [0], [0]>} : vector<4x16x16xf32>, vector<4x16x16xf32>, vector<4x16x16xf32> -> vector<4x16x16xf32>
    %cst_16 = arith.constant -1.000000e+30 : f32
    "tpu.trace_stop"() : () -> ()
    %52 = vector.shape_cast %50 : vector<1x16x16xi1> to vector<1x16x16xi1>
    %53 = vector.broadcast %52 : vector<1x16x16xi1> to vector<4x16x16xi1>
    %54 = vector.broadcast %cst_16 : f32 to vector<4x16x16xf32>
    %55 = arith.select %53, %54, %51 : vector<4x16x16xi1>, vector<4x16x16xf32>
    %cst_17 = arith.constant dense<0xFF800000> : vector<4x16xf32>
    %56 = vector.multi_reduction <maximumf>, %55, %cst_17 [2] : vector<4x16x16xf32> to vector<4x16xf32>
    %57 = vector.shape_cast %56 : vector<4x16xf32> to vector<4x16x1xf32>
    %58 = vector.broadcast %57 : vector<4x16x1xf32> to vector<4x16x16xf32>
    %59 = arith.subf %55, %58 : vector<4x16x16xf32>
    %60 = math.exp %59 : vector<4x16x16xf32>
    %cst_18 = arith.constant dense<0.000000e+00> : vector<4x16xf32>
    %61 = vector.multi_reduction <add>, %60, %cst_18 [2] : vector<4x16x16xf32> to vector<4x16xf32>
    %62 = vector.shape_cast %61 : vector<4x16xf32> to vector<4x16x1xf32>
    %63 = tpu.reciprocal %62 {approx = true} : vector<4x16x1xf32> -> vector<4x16x1xf32>
    %64 = vector.broadcast %63 : vector<4x16x1xf32> to vector<4x16x16xf32>
    %65 = arith.mulf %60, %64 : vector<4x16x16xf32>
    "tpu.trace_start"() <{level = 10 : i32, message = "bqk,bkd->bqd"}> : () -> ()
    %cst_19 = arith.constant dense<0.000000e+00> : vector<4x16x16xf32>
    %66 = tpu.matmul %65, %46, %cst_19 {dimension_numbers = #tpu.dot_dimension_numbers<[2], [1], [1], [2], [0, 0, 0, 1, 1, 2], [0], [0]>} : vector<4x16x16xf32>, vector<4x16x16xf32>, vector<4x16x16xf32> -> vector<4x16x16xf32>
    "tpu.trace_stop"() : () -> ()
    %67 = vector.extract_strided_slice %66 {offsets = [0, 0, 0], sizes = [1, 16, 16], strides = [1, 1, 1]} : vector<4x16x16xf32> to vector<1x16x16xf32>
    %68 = vector.shape_cast %67 : vector<1x16x16xf32> to vector<16x16xf32>
    %69 = vector.extract_strided_slice %66 {offsets = [1, 0, 0], sizes = [1, 16, 16], strides = [1, 1, 1]} : vector<4x16x16xf32> to vector<1x16x16xf32>
    %70 = vector.shape_cast %69 : vector<1x16x16xf32> to vector<16x16xf32>
    %71 = vector.extract_strided_slice %66 {offsets = [2, 0, 0], sizes = [1, 16, 16], strides = [1, 1, 1]} : vector<4x16x16xf32> to vector<1x16x16xf32>
    %72 = vector.shape_cast %71 : vector<1x16x16xf32> to vector<16x16xf32>
    %73 = vector.extract_strided_slice %66 {offsets = [3, 0, 0], sizes = [1, 16, 16], strides = [1, 1, 1]} : vector<4x16x16xf32> to vector<1x16x16xf32>
    %74 = vector.shape_cast %73 : vector<1x16x16xf32> to vector<16x16xf32>
    %75 = tpu.concatenate %68, %70, %72, %74 in 1 : vector<16x16xf32>, vector<16x16xf32>, vector<16x16xf32>, vector<16x16xf32> -> vector<16x64xf32>
    %c0_20 = arith.constant 0 : index
    %c0_21 = arith.constant 0 : index
    %76 = vector.load %arg6[%c0_20, %c0_21] : memref<64x64xf32, #tpu.memory_space<vmem>>, vector<64x64xf32>
    %cst_22 = arith.constant dense<0.000000e+00> : vector<16x64xf32>
    %77 = tpu.matmul %75, %76, %cst_22 {dimension_numbers = #tpu.dot_dimension_numbers<[1], [0], [0], [1], [0, 0, 1, 1], [], []>} : vector<16x64xf32>, vector<64x64xf32>, vector<16x64xf32> -> vector<16x64xf32>
    %c0_23 = arith.constant 0 : index
    %c0_24 = arith.constant 0 : index
    %78 = vector.load %arg7[%c0_23, %c0_24] : memref<1x64xf32, #tpu.memory_space<vmem>>, vector<1x64xf32>
    %79 = vector.broadcast %78 : vector<1x64xf32> to vector<16x64xf32>
    %80 = arith.addf %77, %79 : vector<16x64xf32>
    %81 = arith.addf %80, %1 : vector<16x64xf32>
    %cst_25 = arith.constant dense<0.000000e+00> : vector<16xf32>
    %82 = vector.multi_reduction <add>, %81, %cst_25 [1] : vector<16x64xf32> to vector<16xf32>
    %83 = vector.shape_cast %82 : vector<16xf32> to vector<16x1xf32>
    %cst_26 = arith.constant 6.400000e+01 : f32
    %84 = vector.broadcast %cst_26 : f32 to vector<16x1xf32>
    %85 = arith.divf %83, %84 : vector<16x1xf32>
    %86 = arith.mulf %81, %81 : vector<16x64xf32>
    %cst_27 = arith.constant dense<0.000000e+00> : vector<16xf32>
    %87 = vector.multi_reduction <add>, %86, %cst_27 [1] : vector<16x64xf32> to vector<16xf32>
    %88 = vector.shape_cast %87 : vector<16xf32> to vector<16x1xf32>
    %cst_28 = arith.constant 6.400000e+01 : f32
    %89 = vector.broadcast %cst_28 : f32 to vector<16x1xf32>
    %90 = arith.divf %88, %89 : vector<16x1xf32>
    %91 = arith.mulf %85, %85 : vector<16x1xf32>
    %92 = arith.subf %90, %91 : vector<16x1xf32>
    %93 = vector.broadcast %85 : vector<16x1xf32> to vector<16x64xf32>
    %94 = arith.subf %81, %93 : vector<16x64xf32>
    %cst_29 = arith.constant 9.99999974E-6 : f32
    %95 = vector.broadcast %cst_29 : f32 to vector<16x1xf32>
    %96 = arith.addf %92, %95 : vector<16x1xf32>
    %97 = math.rsqrt %96 : vector<16x1xf32>
    %98 = vector.broadcast %97 : vector<16x1xf32> to vector<16x64xf32>
    %99 = arith.mulf %94, %98 : vector<16x64xf32>
    %c0_30 = arith.constant 0 : index
    %c0_31 = arith.constant 0 : index
    %100 = vector.load %arg8[%c0_30, %c0_31] : memref<1x64xf32, #tpu.memory_space<vmem>>, vector<1x64xf32>
    %101 = vector.broadcast %100 : vector<1x64xf32> to vector<16x64xf32>
    %102 = arith.mulf %99, %101 : vector<16x64xf32>
    %c0_32 = arith.constant 0 : index
    %c0_33 = arith.constant 0 : index
    %103 = vector.load %arg9[%c0_32, %c0_33] : memref<1x64xf32, #tpu.memory_space<vmem>>, vector<1x64xf32>
    %104 = vector.broadcast %103 : vector<1x64xf32> to vector<16x64xf32>
    %105 = arith.addf %102, %104 : vector<16x64xf32>
    %c0_34 = arith.constant 0 : index
    %c0_35 = arith.constant 0 : index
    %106 = vector.load %arg10[%c0_34, %c0_35] : memref<64x256xf32, #tpu.memory_space<vmem>>, vector<64x256xf32>
    %cst_36 = arith.constant dense<0.000000e+00> : vector<16x256xf32>
    %107 = tpu.matmul %105, %106, %cst_36 {dimension_numbers = #tpu.dot_dimension_numbers<[1], [0], [0], [1], [0, 0, 1, 1], [], []>} : vector<16x64xf32>, vector<64x256xf32>, vector<16x256xf32> -> vector<16x256xf32>
    %c0_37 = arith.constant 0 : index
    %c0_38 = arith.constant 0 : index
    %108 = vector.load %arg11[%c0_37, %c0_38] : memref<1x256xf32, #tpu.memory_space<vmem>>, vector<1x256xf32>
    %109 = vector.broadcast %108 : vector<1x256xf32> to vector<16x256xf32>
    %110 = arith.addf %107, %109 : vector<16x256xf32>
    %cst_39 = arith.constant 1.702000e+00 : f32
    %111 = vector.broadcast %cst_39 : f32 to vector<16x256xf32>
    %112 = arith.mulf %111, %110 : vector<16x256xf32>
    %cst_40 = arith.constant 0.000000e+00 : f32
    %113 = vector.broadcast %cst_40 : f32 to vector<16x256xf32>
    %114 = arith.subf %113, %112 : vector<16x256xf32>
    %115 = math.exp %114 : vector<16x256xf32>
    %cst_41 = arith.constant 1.000000e+00 : f32
    %116 = vector.broadcast %cst_41 : f32 to vector<16x256xf32>
    %117 = arith.addf %116, %115 : vector<16x256xf32>
    %cst_42 = arith.constant 1.000000e+00 : f32
    %118 = vector.broadcast %cst_42 : f32 to vector<16x256xf32>
    %119 = arith.divf %118, %117 : vector<16x256xf32>
    %120 = arith.mulf %110, %119 : vector<16x256xf32>
    %c0_43 = arith.constant 0 : index
    %c0_44 = arith.constant 0 : index
    %121 = vector.load %arg12[%c0_43, %c0_44] : memref<256x64xf32, #tpu.memory_space<vmem>>, vector<256x64xf32>
    %cst_45 = arith.constant dense<0.000000e+00> : vector<16x64xf32>
    %122 = tpu.matmul %120, %121, %cst_45 {dimension_numbers = #tpu.dot_dimension_numbers<[1], [0], [0], [1], [0, 0, 1, 1], [], []>} : vector<16x256xf32>, vector<256x64xf32>, vector<16x64xf32> -> vector<16x64xf32>
    %c0_46 = arith.constant 0 : index
    %c0_47 = arith.constant 0 : index
    %123 = vector.load %arg13[%c0_46, %c0_47] : memref<1x64xf32, #tpu.memory_space<vmem>>, vector<1x64xf32>
    %124 = vector.broadcast %123 : vector<1x64xf32> to vector<16x64xf32>
    %125 = arith.addf %122, %124 : vector<16x64xf32>
    %126 = arith.addf %125, %81 : vector<16x64xf32>
    %127 = vector.shape_cast %126 : vector<16x64xf32> to vector<1x16x64xf32>
    %c0_48 = arith.constant 0 : index
    %c0_49 = arith.constant 0 : index
    %c0_50 = arith.constant 0 : index
    %128 = vector.load %arg14[%c0_48, %c0_49, %c0_50] : memref<1x16x64xf32, #tpu.memory_space<vmem>>, vector<1x16x64xf32>
    tpu.vector_store %arg14[%c0_48, %c0_49, %c0_50], %127 {strides = array<i32>} : memref<1x16x64xf32, #tpu.memory_space<vmem>>, vector<1x16x64xf32>,
    return
  }
  func.func @transform_0(%arg0: i32) -> (i32, i32, i32) {
    %c0_i32 = arith.constant 0 : i32
    %c0_i32_0 = arith.constant 0 : i32
    %c0_i32_1 = arith.constant 0 : i32
    return %arg0, %c0_i32, %c0_i32_0 : i32, i32, i32
  }
  func.func @transform_1(%arg0: i32) -> (i32, i32) {
    %c0_i32 = arith.constant 0 : i32
    %c0_i32_0 = arith.constant 0 : i32
    %c0_i32_1 = arith.constant 0 : i32
    return %c0_i32, %c0_i32_0 : i32, i32
  }
  func.func @transform_2(%arg0: i32) -> (i32, i32) {
    %c0_i32 = arith.constant 0 : i32
    %c0_i32_0 = arith.constant 0 : i32
    %c0_i32_1 = arith.constant 0 : i32
    return %c0_i32, %c0_i32_0 : i32, i32
  }
  func.func @transform_3(%arg0: i32) -> (i32, i32) {
    %c0_i32 = arith.constant 0 : i32
    %c0_i32_0 = arith.constant 0 : i32
    %c0_i32_1 = arith.constant 0 : i32
    return %c0_i32, %c0_i32_0 : i32, i32
  }
  func.func @transform_4(%arg0: i32) -> (i32, i32) {
    %c0_i32 = arith.constant 0 : i32
    %c0_i32_0 = arith.constant 0 : i32
    %c0_i32_1 = arith.constant 0 : i32
    return %c0_i32, %c0_i32_0 : i32, i32
  }
  func.func @transform_5(%arg0: i32) -> (i32, i32) {
    %c0_i32 = arith.constant 0 : i32
    %c0_i32_0 = arith.constant 0 : i32
    %c0_i32_1 = arith.constant 0 : i32
    return %c0_i32, %c0_i32_0 : i32, i32
  }
  func.func @transform_6(%arg0: i32) -> (i32, i32) {
    %c0_i32 = arith.constant 0 : i32
    %c0_i32_0 = arith.constant 0 : i32
    %c0_i32_1 = arith.constant 0 : i32
    return %c0_i32, %c0_i32_0 : i32, i32
  }
  func.func @transform_7(%arg0: i32) -> (i32, i32) {
    %c0_i32 = arith.constant 0 : i32
    %c0_i32_0 = arith.constant 0 : i32
    %c0_i32_1 = arith.constant 0 : i32
    return %c0_i32, %c0_i32_0 : i32, i32
  }
  func.func @transform_8(%arg0: i32) -> (i32, i32) {
    %c0_i32 = arith.constant 0 : i32
    %c0_i32_0 = arith.constant 0 : i32
    %c0_i32_1 = arith.constant 0 : i32
    return %c0_i32, %c0_i32_0 : i32, i32
  }
  func.func @transform_9(%arg0: i32) -> (i32, i32) {
    %c0_i32 = arith.constant 0 : i32
    %c0_i32_0 = arith.constant 0 : i32
    %c0_i32_1 = arith.constant 0 : i32
    return %c0_i32, %c0_i32_0 : i32, i32
  }
  func.func @transform_10(%arg0: i32) -> (i32, i32) {
    %c0_i32 = arith.constant 0 : i32
    %c0_i32_0 = arith.constant 0 : i32
    %c0_i32_1 = arith.constant 0 : i32
    return %c0_i32, %c0_i32_0 : i32, i32
  }
  func.func @transform_11(%arg0: i32) -> (i32, i32) {
    %c0_i32 = arith.constant 0 : i32
    %c0_i32_0 = arith.constant 0 : i32
    %c0_i32_1 = arith.constant 0 : i32
    return %c0_i32, %c0_i32_0 : i32, i32
  }
  func.func @transform_12(%arg0: i32) -> (i32, i32) {
    %c0_i32 = arith.constant 0 : i32
    %c0_i32_0 = arith.constant 0 : i32
    %c0_i32_1 = arith.constant 0 : i32
    return %c0_i32, %c0_i32_0 : i32, i32
  }
  func.func @transform_13(%arg0: i32) -> (i32, i32, i32) {
    %c0_i32 = arith.constant 0 : i32
    %c0_i32_0 = arith.constant 0 : i32
    %c0_i32_1 = arith.constant 0 : i32
    return %arg0, %c0_i32, %c0_i32_0 : i32, i32, i32
  }
}

</mosaic_0001>

<bundles_post_ra>
// kernel: tpu_custom_call.1
= control target key start
LH: loop header
LB: loop body
LE: loop exit
PB: predicated region body
PF: predicated region fallthrough
CT: control target
= control target key end

     0   :  { %s3038_s0 = inlined_call_operand.vmem [shape: f32[2,16,64], index: 0, kind: input, shape index: {}]   ;;  %s3039_s1 = inlined_call_operand.vmem [shape: f32[1,64], index: 1, kind: input, shape index: {}]   ;;  %s3040_s2 = inlined_call_operand.vmem [shape: f32[1,64], index: 2, kind: input, shape index: {}]   ;;  %s3041_s3 = inlined_call_operand.vmem [shape: f32[64,192], index: 3, kind: input, shape index: {}]   ;;  %s3042_s4 = inlined_call_operand.vmem [shape: f32[1,192], index: 4, kind: input, shape index: {}]   ;;  %s3043_s5 = inlined_call_operand.vmem [shape: f32[64,64], index: 5, kind: input, shape index: {}]   ;;  %s3044_s6 = inlined_call_operand.vmem [shape: f32[1,64], index: 6, kind: input, shape index: {}]   ;;  %s3045_s7 = inlined_call_operand.vmem [shape: f32[1,64], index: 7, kind: input, shape index: {}]   ;;  %s3046_s8 = inlined_call_operand.vmem [shape: f32[1,64], index: 8, kind: input, shape index: {}]   ;;  %s3047_s9 = inlined_call_operand.vmem [shape: f32[64,256], index: 9, kind: input, shape index: {}]   ;;  %s3048_s10 = inlined_call_operand.vmem [shape: f32[1,256], index: 10, kind: input, shape index: {}]   ;;  %s3049_s11 = inlined_call_operand.vmem [shape: f32[256,64], index: 11, kind: input, shape index: {}]   ;;  %s3050_s12 = inlined_call_operand.vmem [shape: f32[1,64], index: 12, kind: input, shape index: {}]   ;;  %s3051_s13 = inlined_call_operand.hbm [shape: f32[2,16,64], index: 13, kind: output, shape index: {}]  }
   0x1   :  { %3052 = sst [smem:[#allocation6_spill]] %s3038_s0 }
   0x2   :  { %18 = vsyncpa [#allocation3], 0 }
   0x3   :  { %20 = vsyncpa [#allocation3 + $0x1], 0  ;;  %s2541_s25 = smov 0   ;;  %s2543_s26 = smov 0  }
   0x4   :  { %s2545_s27 = smov 0   ;;  %s2547_s28 = smov 0  }
   0x5 LB: > { %s2562_s29 = sadd.s32 4294967295, %s2458_s28   ;;  %s1931_s30 = sadd.s32 4294967294, %s2458_s28   ;;  %s2458_s28 = sphi %s2547_s28, %s3063_s28   ;;  %s2454_s27 = sphi %s2545_s27, %s3062_s27   ;;  %s2450_s26 = sphi %s2543_s26, %s3061_s26   ;;  %s2446_s25 = sphi %s2541_s25, %s3060_s25  }
   0x6   : > { %s2566_s14 = sadd.s32 1, %s2458_s28   ;;  %s311_s15 = sadd.s32 1, %s2454_s27 }
   0x7   : > { %s308_s16 = ssub.s32 %s2458_s28, %s2566_s14  ;;  %p321_p0 = scmp.ne.s32.totalorder %s2454_s27, %s2450_s26 }
   0x8   : > { %p309_p1 = scmp.eq.s32.totalorder %s308_s16, 0  ;;  %p322_p2 = scmp.eq.s32.totalorder %s2562_s29, 1 }
   0x9   : > { %p327_p3 = scmp.ne.s32.totalorder %s2450_s26, %s2446_s25  ;;  %p328_p4 = scmp.eq.s32.totalorder %s1931_s30, 1 }
   0xa   : > { %s2577_s17 = scalar_select %p309_p1, %s2454_s27, %s311_s15  }
   0xb   : > { %p2579_p5 = por %p322_p2, %p321_p0  ;;  %p2583_p6 = por %p328_p4, %p327_p3 }
   0xc   : > { %3053 = sst [smem:[#allocation5_spill]] %s2577_s17  ;;  %p1934_p7 = scmp.ge.s32.totalorder %s2458_s28, 1 }
   0xd   : > { %p390_p8 = scmp.lt.s32.totalorder %s2458_s28, 3 }
   0xf   : > { %p391_p9 = pnand %p1934_p7, %p390_p8 }
  0x10   : > { %p434_p10 = scmp.lt.s32.totalorder (!%p391_p9), %s2562_s29, 1  ;;  %vm441_vm0 = vcmask (!%p391_p9), 523264   ;;  %s3056_s0 = sld [smem:[#allocation6_spill]] (!%p391_p9)  ;;  %v492_v8 = vld [vmem:[%s3041_s3 + $0x8] sm:$0xff] (!%p391_p9)  ;;  %v494_v9 = vld [vmem:[%s3041_s3 + $0x18] sm:$0xff] (!%p391_p9)  ;;  %v491_v11 = vld [vmem:[%s3041_s3] sm:$0xff] (!%p391_p9)  ;;  %v509_v59 = vlaneseq (!%p391_p9) }
  0x11   : > { %394 = sbr.rel (%p391_p9) target bundleno = 2411 (0x96b), region = 72  ;;  %v2136_v10 = vpack.c.bf16 (!%p391_p9), %v494_v9, %v492_v8  ;;  %v493_v12 = vld [vmem:[%s3041_s3 + $0x10] sm:$0xff] (!%p391_p9)  ;;  %v496_v14 = vld [vmem:[%s3041_s3 + $0x28] sm:$0xff] (!%p391_p9)  ;;  %v498_v15 = vld [vmem:[%s3041_s3 + $0x38] sm:$0xff] (!%p391_p9)  ;;  %v2460_v21 = vmov (!%p391_p9), 0.0   ;;  %vm647_vm1 = vcmask (!%p391_p9), 130048  }
  0x12   : > { %v2138_v13 = vpack.c.bf16 (!%p391_p9), %v493_v12, %v491_v11  ;;  %v495_v16 = vld [vmem:[%s3041_s3 + $0x20] sm:$0xff] (!%p391_p9)  ;;  %v2140_v17 = vpack.c.bf16 (!%p391_p9), %v498_v15, %v496_v14  ;;  %v497_v18 = vld [vmem:[%s3041_s3 + $0x30] sm:$0xff] (!%p391_p9)  ;;  %v500_v19 = vld [vmem:[%s3041_s3 + $0x48] sm:$0xff] (!%p391_p9)  ;;  %589 = vmatprep.mubr.f32.mxu1 (!%p391_p9), %v2460_v21  ;;  %v2669_v60 = vshrl.u32 (!%p391_p9), %v509_v59, 7  ;;  %s2462_s17 = smov (!%p391_p9), 112   ;;  %s2463_s30 = smov (!%p391_p9), 80  }
  0x13   : > { %2137 = vmatprep.subr.bf16.mxu1 (!%p391_p9), %v2136_v10  ;;  %v502_v20 = vld [vmem:[%s3041_s3 + $0x58] sm:$0xff] (!%p391_p9)  ;;  %v2142_v22 = vpack.c.bf16 (!%p391_p9), %v497_v18, %v495_v16  ;;  %v499_v24 = vld [vmem:[%s3041_s3 + $0x40] sm:$0xff] (!%p391_p9)  ;;  %v501_v25 = vld [vmem:[%s3041_s3 + $0x50] sm:$0xff] (!%p391_p9)  ;;  %s2464_s15 = smov (!%p391_p9), 64   ;;  %vm1442_vm5 = vcmask (!%p391_p9), 261120   ;;  %vm1445_vm6 = vcmask (!%p391_p9), 392192  }
  0x14   : > { %2139 = vmatpush1.bf16.msra.mxu1 (!%p391_p9), %v2138_v13  ;;  %v2144_v23 = vpack.c.bf16 (!%p391_p9), %v502_v20, %v500_v19  ;;  %v504_v26 = vld [vmem:[%s3041_s3 + $0x68] sm:$0xff] (!%p391_p9)  ;;  %v506_v27 = vld [vmem:[%s3041_s3 + $0x78] sm:$0xff] (!%p391_p9)  ;;  %v2146_v28 = vpack.c.bf16 (!%p391_p9), %v501_v25, %v499_v24  ;;  %v503_v30 = vld [vmem:[%s3041_s3 + $0x60] sm:$0xff] (!%p391_p9)  ;;  %v511_v61 = vsub.s32 (!%p391_p9), 0, %v2669_v60  ;;  %s431_s22 = sand.u32 (!%p391_p9), 1, %s2450_s26  }
  0x15   : > { %2141 = vmatprep.subr.bf16.mxu1 (!%p391_p9), %v2140_v17  ;;  %v2148_v29 = vpack.c.bf16 (!%p391_p9), %v506_v27, %v504_v26  ;;  %v505_v31 = vld [vmem:[%s3041_s3 + $0x70] sm:$0xff] (!%p391_p9)  ;;  %v1938_v51 = vld [vmem:[%s3039_s1] ss:$0 sm:$0xff] (!%p391_p9)  ;;  %vm2692_vm2 = vmpackc.low (!%p391_p9), %vm647_vm1, %vm647_vm1 }
  0x16   : > { %v2150_v32 = vpack.c.bf16 (!%p391_p9), %v505_v31, %v503_v30  ;;  %v1939_v54 = vld [vmem:[%s3040_s2] ss:$0 sm:$0xff] (!%p391_p9) }
  0x17   : > { %v507_v62 = vld [vmem:[%s3042_s4] sm:$0x3] (!%p391_p9) }
  0x18   : > { %s435_s20 = scalar_select %p434_p10, %s2562_s29, 1  ;;  %2143 = vmatpush1.bf16.msra.mxu1 %v2142_v22  ;;  %v512_v63 = vrot.slane %v507_v62, %v511_v61 }
  0x19   : > { %2145 = vmatprep.subr.bf16.mxu1 %v2144_v23 }
  0x1a   : > { %s1979_s21 = sshll.u32 %s435_s20, 4 }
  0x1b   : > { %s438_s24 = scalar_lea.vmem %s3056_s0, %s1979_s21  ;;  %s2461_s0 = smov 96  }
  0x1c   : > { %v2594_v0 = vld [vmem:[%s438_s24 + $0x8] sm:$0xff]  ;;  %v2596_v1 = vld [vmem:[%s438_s24] sm:$0xff]  ;;  %2147 = vmatpush1.bf16.msra.mxu1 %v2146_v28  ;;  %s2468_s24 = smov [#allocation2]  }
  0x1d   : > { %v445_v2 = vsel %vm441_vm0, %v2594_v0, 0.0  ;;  %v442_v3 = vsel %vm441_vm0, %v2596_v1, 0.0  ;;  %v452_v4 = vmul.f32 %v2594_v0, %v2594_v0  ;;  %v451_v5 = vmul.f32 %v2596_v1, %v2596_v1  ;;  %2149 = vmatprep.subr.bf16.mxu1 %v2148_v29 }
  0x1e   : > { %446 = vadd.xlane.f32.xlu1 %v445_v2  ;;  %443 = vadd.xlane.f32.xlu0 %v442_v3  ;;  %v515_v2 = vsub.s32 1, %v2669_v60 }
  0x1f   : > { %v456_v6 = vsel %vm441_vm0, %v452_v4, 0.0  ;;  %v453_v7 = vsel %vm441_vm0, %v451_v5, 0.0 }
  0x20   : > { %2151 = vmatpush1.bf16.msra.mxu1 %v2150_v32 }
  0x22   : > { %457 = vadd.xlane.f32.xlu1 %v456_v6  ;;  %454 = vadd.xlane.f32.xlu0 %v453_v7  ;;  %v516_v6 = vrot.slane %v507_v62, %v515_v2 }
  0xab   : > { %v447_v33 = vpop.xlane.xlu1 %446  ;;  %v444_v34 = vpop.xlane.xlu0 %443 }
  0xac   : > { %v450_v35 = vmul.f32 0.015625, %v447_v33  ;;  %v449_v36 = vmul.f32 0.015625, %v444_v34 }
  0xae   : > { %v462_v37 = vmul.f32 %v450_v35, %v450_v35  ;;  %v461_v40 = vmul.f32 %v449_v36, %v449_v36  ;;  %v466_v48 = vsub.f32 %v2594_v0, %v450_v35  ;;  %v465_v49 = vsub.f32 %v2596_v1, %v449_v36 }
  0xaf   : > { %v458_v38 = vpop.xlane.xlu1 %457  ;;  %v455_v39 = vpop.xlane.xlu0 %454 }
  0xb0   : > { %v460_v41 = vmul.f32 0.015625, %v458_v38  ;;  %v459_v42 = vmul.f32 0.015625, %v455_v39 }
  0xb2   : > { %v464_v43 = vsub.f32 %v460_v41, %v462_v37  ;;  %v463_v44 = vsub.f32 %v459_v42, %v461_v40  ;;  %v638_v42 = vadd.s32 8, %v2669_v60 }
  0xb4   : > { %v468_v45 = vadd.f32 1e-05, %v464_v43  ;;  %v467_v46 = vadd.f32 1e-05, %v463_v44  ;;  %v640_v43 = vand.u32 127, %v509_v59 }
  0xb6   : > { %2340 = vrsqrt.f32 %v468_v45  ;;  %vm642_vm3 = vcmp.gt.s32.totalorder %v640_v43, %v638_v42  ;;  %vm641_vm4 = vcmp.gt.s32.totalorder %v640_v43, %v2669_v60 }
  0xb7   : > { %2342 = vrsqrt.f32 %v467_v46 }
  0xc0   : > { %v2341_v47 = vpop.eup %2340 }
  0xc1   : > { %v2343_v50 = vpop.eup %2342  ;;  %v472_v53 = vmul.f32 %v2341_v47, %v466_v48 }
  0xc2   : > { %v471_v52 = vmul.f32 %v2343_v50, %v465_v49 }
  0xc3   : > { %v481_v57 = vmul.f32 %v1938_v51, %v472_v53 }
  0xc4   : > { %v480_v55 = vmul.f32 %v1938_v51, %v471_v52 }
  0xc5   : > { %v490_v58 = vadd.f32 %v1939_v54, %v481_v57 }
  0xc6   : > { %v489_v56 = vadd.f32 %v1939_v54, %v480_v55 }
  0xc8   : > { %1940 = vmatmul.mubr.msk.f32.vlgmr.msra.gmra.mrb[0].mxu1 %vm441_vm0, %v489_v56 }
  0xc9   : > { %595 = vmatprep.mubr.f32.mxu1 %v2460_v21 }
  0xcc   : > { %1941 = vmatmul.mubr.msk.f32.gmra.mrb[2].mxu1 %vm441_vm0, %v490_v58 }
 0x19b   : > { %v591_v3 = vpop.f32.mrb[0].mxu1 }
 0x19c   : > { %v592_v4 = vadd.f32 %v591_v3, %v512_v63  ;;  %v593_v5 = vpop.f32.mrb[1].mxu1 }
 0x19d   : > { %v594_v10 = vadd.f32 %v593_v5, %v516_v6 }
 0x19e   : > { %608 = vrot.lane.b32.xlu1 %v592_v4, %s2461_s0  ;;  %604 = vrot.lane.b32.xlu0 %v592_v4, %s2462_s17 }
 0x19f   : > { %2065 = vmatprep.mubr.msk.f32.mxu1 %vm647_vm1, %v592_v4  ;;  %v597_v7 = vpop.f32.mrb[2].mxu1 }
 0x1a0   : > { %v598_v8 = vadd.f32 %v597_v7, %v512_v63  ;;  %v599_v9 = vpop.f32.mrb[3].mxu1 }
 0x1a1   : > { %v600_v11 = vadd.f32 %v599_v9, %v516_v6 }
 0x1a2   : > { %606 = vrot.lane.b32.xlu1 %v598_v8, %s2462_s17  ;;  %612 = vrot.lane.b32.xlu0 %v592_v4, %s2463_s30  ;;  %v2305_v14 = vpack.i.bf16 %v598_v8, %v592_v4 }
 0x1a3   : > { %v2176_v12 = vpack.c.bf16 %v600_v11, %v594_v10  ;;  %v2685_v13 = vpack.i.bf16 %v600_v11, %v594_v10 }
 0x1a6   : > { %610 = vrot.lane.b32.xlu1 %v598_v8, %s2461_s0  ;;  %2306 = vrot.lane.b32.xlu0 %v2305_v14, %s2464_s15 }
 0x1aa   : > { %614 = vrot.lane.b32.xlu1 %v598_v8, %s2463_s30 }
 0x210   : > { %v609_v15 = vpop.permute.xlu1 %608  ;;  %v605_v16 = vpop.permute.xlu0 %604 }
 0x211   : > { %2079 = vmatprep.mubr.msk.f32.mxu0 %vm647_vm1, %v609_v15 }
 0x214   : > { %v607_v17 = vpop.permute.xlu1 %606  ;;  %v613_v18 = vpop.permute.xlu0 %612 }
 0x215   : > { %v2310_v19 = vpack.i.bf16 %v607_v17, %v605_v16 }
 0x217   : > { %2311 = vrot.lane.b32.xlu1 %v2310_v19, %s2464_s15 }
 0x218   : > { %v611_v20 = vpop.permute.xlu1 %610  ;;  %v2307_v22 = vpop.permute.xlu0 %2306 }
 0x219   : > { %v2315_v23 = vpack.i.bf16 %v611_v20, %v609_v15  ;;  %v2309_v24 = vunpack.i.h.bf16 %v2307_v22  ;;  %v2308_v25 = vunpack.i.l.bf16 %v2307_v22 }
 0x21b   : > { %v2152_v27 = vpack.c.bf16 %v2309_v24, %v2308_v25  ;;  %2316 = vrot.lane.b32.xlu0 %v2315_v23, %s2464_s15 }
 0x21c   : > { %v615_v28 = vpop.permute.xlu1 %614 }
 0x21d   : > { %v2320_v29 = vpack.i.bf16 %v615_v28, %v613_v18  ;;  %2154 = vmatprep.subr.msk.bf16.mxu1 %vm2692_vm2, %v2152_v27 }
 0x21e   : > { %2157 = vmatpush3.bf16.xpose.msk.msra.mxu1 %vm2692_vm2, %v2152_v27 }
 0x21f   : > { %2321 = vrot.lane.b32.xlu1 %v2320_v29, %s2464_s15 }
 0x225   : > { %2066 = vmatmul.mubr.msk.f32.vlgmr.msra.gmra.mrb[4].mxu1 %vm647_vm1, %v598_v8 }
 0x226   : > { %2072 = vmatprep.mubr.msk.f32.mxu1 %vm647_vm1, %v605_v16 }
 0x289   : > { %v2312_v30 = vpop.permute.xlu1 %2311 }
 0x28a   : > { %v2314_v31 = vunpack.i.h.bf16 %v2312_v30  ;;  %v2313_v32 = vunpack.i.l.bf16 %v2312_v30 }
 0x28c   : > { %v2158_v33 = vpack.c.bf16 %v2314_v31, %v2313_v32 }
 0x28d   : > { %v2317_v34 = vpop.permute.xlu0 %2316 }
 0x28e   : > { %v2319_v35 = vunpack.i.h.bf16 %v2317_v34  ;;  %v2318_v36 = vunpack.i.l.bf16 %v2317_v34  ;;  %2160 = vmatprep.subr.msk.bf16.mxu1 %vm2692_vm2, %v2158_v33 }
 0x28f   : > { %2163 = vmatpush3.bf16.xpose.msk.msra.mxu1 %vm2692_vm2, %v2158_v33 }
 0x290   : > { %v2164_v37 = vpack.c.bf16 %v2319_v35, %v2318_v36 }
 0x291   : > { %v2322_v38 = vpop.permute.xlu1 %2321 }
 0x292   : > { %v2324_v39 = vunpack.i.h.bf16 %v2322_v38  ;;  %v2323_v40 = vunpack.i.l.bf16 %v2322_v38  ;;  %2166 = vmatprep.subr.msk.bf16.mxu0 %vm2692_vm2, %v2164_v37 }
 0x293   : > { %2169 = vmatpush3.bf16.xpose.msk.msra.mxu0 %vm2692_vm2, %v2164_v37 }
 0x294   : > { %v2170_v41 = vpack.c.bf16 %v2324_v39, %v2323_v40  ;;  %2177 = vmatprep.subr.bf16.mxu0 %v2176_v12 }
 0x296   : > { %2073 = vmatmul.mubr.msk.f32.vlgmr.msra.gmra.mrb[6].mxu1 %vm647_vm1, %v607_v17  ;;  %2172 = vmatprep.subr.msk.bf16.mxu1 %vm2692_vm2, %v2170_v41 }
 0x297   : > { %2175 = vmatpush3.bf16.xpose.msk.msra.mxu1 %vm2692_vm2, %v2170_v41  ;;  %2086 = vmatprep.mubr.msk.f32.mxu1 %vm647_vm1, %v613_v18 }
 0x29a   : > { %2080 = vmatmul.mubr.msk.f32.vlgmr.msra.gmra.mrb[0].mxu0 %vm647_vm1, %v611_v20 }
 0x29b   : > { %2179 = vmatpush3.bf16.msra.mxu0 %v2176_v12 }
 0x29e   : > { %2087 = vmatmul.mubr.msk.f32.vlgmr.msra.gmra.mrb[8].mxu1 %vm647_vm1, %v615_v28 }
 0x2f8   : > { %v2067_v44 = vpop.f32.mrb[4].mxu1 }
 0x2f9   : > { %v997_v45 = vsel %vm642_vm3, -1e+30, %v2067_v44  ;;  %v722_v46 = vpop.f32.mrb[5].mxu1 }
 0x2fa   : > { %v996_v47 = vsel %vm641_vm4, -1e+30, %v722_v46  ;;  %v1007_v48 = vsel %vm647_vm1, %v997_v45, -inf }
 0x2fb   : > { %1008 = vmax.xlane.f32.xlu1 %v1007_v48  ;;  %v1004_v49 = vsel %vm647_vm1, %v996_v47, -inf }
 0x2fc   : > { %1005 = vmax.xlane.f32.xlu0 %v1004_v49 }
 0x369   : > { %v2074_v50 = vpop.f32.mrb[6].mxu1 }
 0x36a   : > { %v999_v51 = vsel %vm642_vm3, -1e+30, %v2074_v50  ;;  %v809_v52 = vpop.f32.mrb[7].mxu1 }
 0x36b   : > { %v1013_v53 = vsel %vm647_vm1, %v999_v51, -inf  ;;  %v998_v54 = vsel %vm641_vm4, -1e+30, %v809_v52 }
 0x36c   : > { %1014 = vmax.xlane.f32.xlu0 %v1013_v53  ;;  %v1010_v59 = vsel %vm647_vm1, %v998_v54, -inf }
 0x36d   : > { %v2081_v55 = vpop.f32.mrb[0].mxu0 }
 0x36e   : > { %v1001_v56 = vsel %vm642_vm3, -1e+30, %v2081_v55  ;;  %v896_v57 = vpop.f32.mrb[1].mxu0 }
 0x36f   : > { %v1019_v58 = vsel %vm647_vm1, %v1001_v56, -inf  ;;  %v1000_v62 = vsel %vm641_vm4, -1e+30, %v896_v57 }
 0x370   : > { %1020 = vmax.xlane.f32.xlu1 %v1019_v58  ;;  %1011 = vmax.xlane.f32.xlu0 %v1010_v59  ;;  %v1016_v5 = vsel %vm647_vm1, %v1000_v62, -inf }
 0x371   : > { %v2088_v63 = vpop.f32.mrb[8].mxu1 }
 0x372   : > { %v1003_v3 = vsel %vm642_vm3, -1e+30, %v2088_v63  ;;  %v983_v4 = vpop.f32.mrb[9].mxu1 }
 0x373   : > { %v1025_v6 = vsel %vm647_vm1, %v1003_v3, -inf  ;;  %v1002_v7 = vsel %vm641_vm4, -1e+30, %v983_v4 }
 0x374   : > { %1017 = vmax.xlane.f32.xlu0 %v1016_v5  ;;  %1026 = vmax.xlane.f32.xlu1 %v1025_v6  ;;  %v1022_v8 = vsel %vm647_vm1, %v1002_v7, -inf }
 0x378   : > { %1023 = vmax.xlane.f32.xlu0 %v1022_v8 }
 0x388   : > { %v1009_v9 = vpop.xlane.xlu1 %1008 }
 0x389   : > { %v1029_v10 = vsub.f32 %v997_v45, %v1009_v9  ;;  %v1006_v11 = vpop.xlane.xlu0 %1005 }
 0x38a   : > { %v1028_v12 = vsub.f32 %v996_v47, %v1006_v11 }
 0x38b   : > { %v1038_v14 = vmul.f32 1.442695, %v1029_v10 }
 0x38c   : > { %v1036_v15 = vmul.f32 1.442695, %v1028_v12 }
 0x38d   : > { %2344 = vpow2.f32 %v1038_v14 }
 0x38e   : > { %2346 = vpow2.f32 %v1036_v15 }
 0x397   : > { %v2345_v16 = vpop.eup %2344 }
 0x398   : > { %v2347_v17 = vpop.eup %2346  ;;  %v1055_v18 = vsel %vm647_vm1, %v2345_v16, 0.0 }
 0x399   : > { %1056 = vadd.xlane.f32.xlu1 %v1055_v18  ;;  %v1052_v19 = vsel %vm647_vm1, %v2347_v17, 0.0 }
 0x39a   : > { %1053 = vadd.xlane.f32.xlu0 %v1052_v19 }
 0x3f9   : > { %v1015_v20 = vpop.xlane.xlu0 %1014 }
 0x3fa   : > { %v1031_v22 = vsub.f32 %v999_v51, %v1015_v20 }
 0x3fc   : > { %v1042_v23 = vmul.f32 1.442695, %v1031_v22 }
 0x3fd   : > { %v1021_v24 = vpop.xlane.xlu1 %1020  ;;  %v1012_v25 = vpop.xlane.xlu0 %1011 }
 0x3fe   : > { %2348 = vpow2.f32 %v1042_v23  ;;  %v1033_v26 = vsub.f32 %v1001_v56, %v1021_v24  ;;  %v1030_v27 = vsub.f32 %v998_v54, %v1012_v25 }
 0x400   : > { %v1046_v28 = vmul.f32 1.442695, %v1033_v26  ;;  %v1040_v29 = vmul.f32 1.442695, %v1030_v27 }
 0x401   : > { %v1018_v30 = vpop.xlane.xlu0 %1017  ;;  %v1027_v31 = vpop.xlane.xlu1 %1026 }
 0x402   : > { %2350 = vpow2.f32 %v1046_v28  ;;  %v1032_v32 = vsub.f32 %v1000_v62, %v1018_v30  ;;  %v1035_v33 = vsub.f32 %v1003_v3, %v1027_v31  ;;  %v1448_v31 = vld [vmem:[%s3043_s5] sm:$0xff] }
 0x403   : > { %2352 = vpow2.f32 %v1040_v29 }
 0x404   : > { %v1044_v34 = vmul.f32 1.442695, %v1032_v32  ;;  %v1050_v35 = vmul.f32 1.442695, %v1035_v33  ;;  %v1449_v32 = vld [vmem:[%s3043_s5 + $0x8] sm:$0xff]  ;;  %v1450_v33 = vld [vmem:[%s3043_s5 + $0x10] sm:$0xff] }
 0x405   : > { %v1024_v36 = vpop.xlane.xlu0 %1023 }
 0x406   : > { %2354 = vpow2.f32 %v1044_v34  ;;  %v1034_v37 = vsub.f32 %v1002_v7, %v1024_v36  ;;  %v2192_v34 = vpack.c.bf16 %v1449_v32, %v1448_v31  ;;  %v1607_v32 = vld [vmem:[%s3047_s9 + $0x68] sm:$0xff] }
 0x407   : > { %2356 = vpow2.f32 %v1050_v35  ;;  %v1451_v35 = vld [vmem:[%s3043_s5 + $0x18] sm:$0xff] }
 0x408   : > { %v2743_v38 = vpop.eup %2348  ;;  %v1048_v39 = vmul.f32 1.442695, %v1034_v37  ;;  %v2196_v36 = vpack.c.bf16 %v1451_v35, %v1450_v33  ;;  %v1452_v37 = vld [vmem:[%s3043_s5 + $0x20] sm:$0xff]  ;;  %v1609_v33 = vld [vmem:[%s3047_s9 + $0x78] sm:$0xff] }
 0x409   : > { %v1061_v40 = vsel %vm647_vm1, %v2743_v38, 0.0  ;;  %v2220_v35 = vpack.c.bf16 %v1609_v33, %v1607_v32  ;;  %v1745_v32 = vld [vmem:[%s3049_s11 + $0x40] sm:$0xff]  ;;  %v1746_v33 = vld [vmem:[%s3049_s11 + $0x48] sm:$0xff] }
 0x40a   : > { %2358 = vpow2.f32 %v1048_v39  ;;  %1062 = vadd.xlane.f32.xlu1 %v1061_v40  ;;  %v1454_v40 = vld [vmem:[%s3043_s5 + $0x30] sm:$0xff] }
 0x40c   : > { %v2351_v41 = vpop.eup %2350 }
 0x40d   : > { %v2353_v42 = vpop.eup %2352  ;;  %v1067_v43 = vsel %vm647_vm1, %v2351_v41, 0.0 }
 0x40e   : > { %1068 = vadd.xlane.f32.xlu1 %v1067_v43  ;;  %v1058_v44 = vsel %vm647_vm1, %v2353_v42, 0.0 }
 0x40f   : > { %1059 = vadd.xlane.f32.xlu0 %v1058_v44 }
 0x410   : > { %v2355_v45 = vpop.eup %2354 }
 0x411   : > { %v2749_v46 = vpop.eup %2356  ;;  %v1064_v47 = vsel %vm647_vm1, %v2355_v45, 0.0 }
 0x412   : > { %v1073_v48 = vsel %vm647_vm1, %v2749_v46, 0.0 }
 0x413   : > { %1074 = vadd.xlane.f32.xlu1 %v1073_v48  ;;  %1065 = vadd.xlane.f32.xlu0 %v1064_v47 }
 0x414   : > { %v2359_v49 = vpop.eup %2358 }
 0x415   : > { %v1070_v50 = vsel %vm647_vm1, %v2359_v49, 0.0 }
 0x417   : > { %1071 = vadd.xlane.f32.xlu0 %v1070_v50 }
 0x424   : > { %2331 = vrot.lane.b32.xlu1 %v2685_v13, %s2461_s0  ;;  %s2465_s0 = smov 16  }
 0x426   : > { %v1057_v51 = vpop.xlane.xlu1 %1056 }
 0x427   : > { %2360 = vrcp.f32 %v1057_v51  ;;  %v1054_v52 = vpop.xlane.xlu0 %1053 }
 0x428   : > { %2336 = vrot.lane.b32.xlu1 %v2685_v13, %s2463_s30  ;;  %2362 = vrcp.f32 %v1054_v52  ;;  %s2467_s30 = smov 48  }
 0x42d   : > { %2326 = vrot.lane.b32.xlu0 %v2685_v13, %s2462_s17  ;;  %s2466_s17 = smov 32  }
 0x431   : > { %v2361_v53 = vpop.eup %2360 }
 0x432   : > { %v2363_v54 = vpop.eup %2362  ;;  %v1085_v56 = vmul.f32 %v2361_v53, %v2345_v16 }
 0x433   : > { %v1084_v55 = vmul.f32 %v2363_v54, %v2347_v17 }
 0x435   : > { %2093 = vmatprep.mubr.msk.f32.mxu0 %vm647_vm1, %v1084_v55 }
 0x436   : > { %2094 = vmatmul.mubr.msk.f32.vlgmr.msra.gmra.mrb[2].mxu0 %vm647_vm1, %v1085_v56 }
 0x497   : > { %v1063_v57 = vpop.xlane.xlu1 %1062 }
 0x49b   : > { %v1069_v58 = vpop.xlane.xlu1 %1068 }
 0x49c   : > { %v1060_v59 = vpop.xlane.xlu0 %1059 }
 0x49d   : > { %2364 = vrcp.f32 %v1060_v59 }
 0x49e   : > { %2366 = vrcp.f32 %v1063_v57 }
 0x49f   : > { %2368 = vrcp.f32 %v1069_v58 }
 0x4a0   : > { %v1075_v62 = vpop.xlane.xlu1 %1074  ;;  %v1066_v63 = vpop.xlane.xlu0 %1065 }
 0x4a1   : > { %2370 = vrcp.f32 %v1066_v63  ;;  %v1966_v63 = vld [vmem:[%s3044_s6] ss:$0 sm:$0xff] }
 0x4a4   : > { %v2332_v3 = vpop.permute.xlu1 %2331  ;;  %v1072_v4 = vpop.xlane.xlu0 %1071 }
 0x4a5   : > { %v2334_v13 = vunpack.i.h.bf16 %v2332_v3  ;;  %v2333_v5 = vunpack.i.l.bf16 %v2332_v3  ;;  %2372 = vrcp.f32 %v1072_v4 }
 0x4a6   : > { %2374 = vrcp.f32 %v1075_v62 }
 0x4a7   : > { %v2365_v6 = vpop.eup %2364  ;;  %v2184_v7 = vpack.c.bf16 %v2334_v13, %v2333_v5 }
 0x4a8   : > { %v2337_v8 = vpop.permute.xlu1 %2336  ;;  %v2327_v9 = vpop.permute.xlu0 %2326  ;;  %v1086_v10 = vmul.f32 %v2365_v6, %v2353_v42 }
 0x4a9   : > { %v2339_v11 = vunpack.i.h.bf16 %v2337_v8  ;;  %v2338_v12 = vunpack.i.l.bf16 %v2337_v8  ;;  %v2329_v14 = vunpack.i.h.bf16 %v2327_v9  ;;  %v2328_v15 = vunpack.i.l.bf16 %v2327_v9  ;;  %2185 = vmatprep.subr.bf16.mxu0 %v2184_v7  ;;  %v2367_v16 = vpop.eup %2366 }
 0x4aa   : > { %2100 = vmatprep.mubr.msk.f32.mxu1 %vm647_vm1, %v1086_v10  ;;  %2187 = vmatpush3.bf16.msra.mxu0 %v2184_v7  ;;  %v2369_v17 = vpop.eup %2368  ;;  %v1087_v25 = vmul.f32 %v2367_v16, %v2743_v38  ;;  %v1453_v38 = vld [vmem:[%s3043_s5 + $0x28] sm:$0xff]  ;;  %v1594_v16 = vld [vmem:[%s3047_s9] sm:$0xff] }
 0x4ab   : > { %v2180_v18 = vpack.c.bf16 %v2329_v14, %v2328_v15  ;;  %v2371_v19 = vpop.eup %2370  ;;  %v2188_v20 = vpack.c.bf16 %v2339_v11, %v2338_v12  ;;  %v1089_v23 = vmul.f32 %v2369_v17, %v2351_v41  ;;  %2193 = vmatprep.subr.bf16.mxu0 %v2192_v34  ;;  %v2200_v39 = vpack.c.bf16 %v1453_v38, %v1452_v37  ;;  %v1455_v41 = vld [vmem:[%s3043_s5 + $0x38] sm:$0xff]  ;;  %v1595_v12 = vld [vmem:[%s3047_s9 + $0x8] sm:$0xff]  ;;  %v1596_v17 = vld [vmem:[%s3047_s9 + $0x10] sm:$0xff] }
 0x4ac   : > { %v1088_v22 = vmul.f32 %v2371_v19, %v2355_v45  ;;  %v2204_v42 = vpack.c.bf16 %v1455_v41, %v1454_v40  ;;  %v1597_v14 = vld [vmem:[%s3047_s9 + $0x18] sm:$0xff]  ;;  %v1599_v19 = vld [vmem:[%s3047_s9 + $0x28] sm:$0xff] }
 0x4ad   : > { %2181 = vmatprep.subr.bf16.mxu1 %v2180_v18  ;;  %v2208_v15 = vpack.c.bf16 %v1597_v14, %v1595_v12  ;;  %v1739_v12 = vld [vmem:[%s3049_s11 + $0x10] sm:$0xff]  ;;  %v1740_v14 = vld [vmem:[%s3049_s11 + $0x18] sm:$0xff] }
 0x4ae   : > { %2183 = vmatpush3.bf16.msra.mxu1 %v2180_v18  ;;  %2107 = vmatprep.mubr.msk.f32.mxu0 %vm647_vm1, %v1088_v22  ;;  %v2210_v18 = vpack.c.bf16 %v1596_v17, %v1594_v16  ;;  %v1757_v16 = vld [vmem:[%s3049_s11 + $0xa0] sm:$0xff]  ;;  %v1758_v17 = vld [vmem:[%s3049_s11 + $0xa8] sm:$0xff] }
 0x4af   : > { %v2373_v24 = vpop.eup %2372  ;;  %2189 = vmatprep.subr.bf16.mxu1 %v2188_v20  ;;  %2108 = vmatmul.mubr.msk.f32.vlgmr.msra.gmra.mrb[4].mxu0 %vm647_vm1, %v1089_v23  ;;  %v1598_v23 = vld [vmem:[%s3047_s9 + $0x20] sm:$0xff] }
 0x4b0   : > { %v2375_v26 = vpop.eup %2374  ;;  %v1090_v27 = vmul.f32 %v2373_v24, %v2359_v49  ;;  %2195 = vmatpush3.bf16.msra.mxu0 %v2192_v34  ;;  %v1600_v24 = vld [vmem:[%s3047_s9 + $0x30] sm:$0xff]  ;;  %v1606_v34 = vld [vmem:[%s3047_s9 + $0x60] sm:$0xff] }
 0x4b1   : > { %2101 = vmatmul.mubr.msk.f32.vlgmr.msra.gmra.mrb[10].mxu1 %vm647_vm1, %v1087_v25  ;;  %v1091_v28 = vmul.f32 %v2375_v26, %v2749_v46  ;;  %2197 = vmatprep.subr.bf16.mxu0 %v2196_v36  ;;  %v2214_v25 = vpack.c.bf16 %v1600_v24, %v1598_v23  ;;  %v1603_v26 = vld [vmem:[%s3047_s9 + $0x48] sm:$0xff]  ;;  %v1759_v23 = vld [vmem:[%s3049_s11 + $0xb0] sm:$0xff]  ;;  %v1760_v24 = vld [vmem:[%s3049_s11 + $0xb8] sm:$0xff] }
 0x4b2   : > { %2191 = vmatpush3.bf16.msra.mxu1 %v2188_v20  ;;  %2114 = vmatprep.mubr.msk.f32.mxu1 %vm647_vm1, %v1090_v27  ;;  %v1601_v20 = vld [vmem:[%s3047_s9 + $0x38] sm:$0xff] }
 0x4b3   : > { %2209 = vmatprep.subr.bf16.mxu1 %v2208_v15  ;;  %v2212_v22 = vpack.c.bf16 %v1601_v20, %v1599_v19  ;;  %v1605_v27 = vld [vmem:[%s3047_s9 + $0x58] sm:$0xff]  ;;  %v2230_v15 = vpack.c.bf16 %v1740_v14, %v1739_v12  ;;  %v1741_v19 = vld [vmem:[%s3049_s11 + $0x20] sm:$0xff]  ;;  %v1742_v20 = vld [vmem:[%s3049_s11 + $0x28] sm:$0xff] }
 0x4b4   : > { %2199 = vmatpush3.bf16.msra.mxu0 %v2196_v36  ;;  %v1608_v36 = vld [vmem:[%s3047_s9 + $0x70] sm:$0xff] }
 0x4b5   : > { %2115 = vmatmul.mubr.msk.f32.vlgmr.msra.gmra.mrb[12].mxu1 %vm647_vm1, %v1091_v28  ;;  %2201 = vmatprep.subr.bf16.mxu0 %v2200_v39  ;;  %v2216_v28 = vpack.c.bf16 %v1605_v27, %v1603_v26  ;;  %v2222_v37 = vpack.c.bf16 %v1608_v36, %v1606_v34  ;;  %v1743_v26 = vld [vmem:[%s3049_s11 + $0x30] sm:$0xff]  ;;  %v1744_v27 = vld [vmem:[%s3049_s11 + $0x38] sm:$0xff]  ;;  %v2242_v34 = vpack.c.bf16 %v1746_v33, %v1745_v32 }
 0x4b6   : > { %1692 = vmatprep.mubr.f32.mxu1 %v2460_v21  ;;  %2211 = vmatpush1.bf16.msra.mxu1 %v2210_v18  ;;  %v2232_v18 = vpack.c.bf16 %v1758_v17, %v1757_v16  ;;  %v1764_v36 = vld [vmem:[%s3049_s11 + $0xd8] sm:$0xff] }
 0x4b7   : > { %2213 = vmatprep.subr.bf16.mxu1 %v2212_v22  ;;  %v2234_v22 = vpack.c.bf16 %v1742_v20, %v1741_v19 }
 0x4b8   : > { %2203 = vmatpush3.bf16.msra.mxu0 %v2200_v39 }
 0x4b9   : > { %2205 = vmatprep.subr.bf16.mxu0 %v2204_v42 }
 0x4ba   : > { %2215 = vmatpush1.bf16.msra.mxu1 %v2214_v25  ;;  %v2236_v25 = vpack.c.bf16 %v1760_v24, %v1759_v23 }
 0x4bb   : > { %2217 = vmatprep.subr.bf16.mxu1 %v2216_v28  ;;  %v2238_v28 = vpack.c.bf16 %v1744_v27, %v1743_v26 }
 0x4bc   : > { %2207 = vmatpush3.bf16.msra.mxu0 %v2204_v42 }
 0x509   : > { %v2095_v29 = vpop.f32.mrb[2].mxu0 }
 0x50a   : > { %v1164_v30 = vpop.f32.mrb[3].mxu0 }
 0x582   : > { %v2109_v43 = vpop.f32.mrb[4].mxu0 }
 0x583   : > { %v1326_v44 = vpop.f32.mrb[5].mxu0 }
 0x584   : > { %v2102_v45 = vpop.f32.mrb[10].mxu1 }
 0x585   : > { %1420 = vrot.lane.b32.xlu0 %v2102_v45, %s2465_s0  ;;  %v1245_v46 = vpop.f32.mrb[11].mxu1 }
 0x586   : > { %1418 = vrot.lane.b32.xlu1 %v1245_v46, %s2465_s0  ;;  %s1935_s0 = sshll.u32 %s431_s22, 4 }
 0x588   : > { %v2116_v47 = vpop.f32.mrb[12].mxu1 }
 0x589   : > { %1428 = vrot.lane.b32.xlu0 %v2109_v43, %s2466_s17  ;;  %v1407_v48 = vpop.f32.mrb[13].mxu1 }
 0x58a   : > { %1426 = vrot.lane.b32.xlu1 %v1326_v44, %s2466_s17  ;;  %s1980_s17 = sshll.u32 %s2562_s29, 8  ;;  %s2997_s29 = scalar_lea.sflag [#allocation3], %s431_s22 }
 0x58b   : > { %s2991_s21 = scalar_lea.hbm %s3051_s13, %s1980_s17 }
 0x58d   : > { %1436 = vrot.lane.b32.xlu0 %v2116_v47, %s2467_s30 }
 0x58e   : > { %1434 = vrot.lane.b32.xlu1 %v1407_v48, %s2467_s30  ;;  %s433_s30 = scalar_lea.vmem [#allocation2], %s1935_s0  ;;  %s2400_s0 = sshll.u32 %s2468_s24, 4  ;;  %s2401_s0 = int_to_ptr.vmem [resolvable:$false] %s2400_s0 }
 0x58f   : > { %s1869_s15 = sshll.u32 %s433_s30, 4  ;;  %s2402_s17 = scalar_lea.vmem %s2401_s0, 512  ;;  %s2993_s15 = int_to_ptr.vmem [resolvable:$true] %s1869_s15 }
 0x590   : > { %s2396_s23 = scalar_lea.vmem %s2993_s15, 256  ;;  %p2403_p0 = scmp.lt.s32.totalorder %s2993_s15, %s2401_s0 }
 0x591   : > { %p2397_p11 = scmp.ne.s32.totalorder %s2993_s15, %s2396_s23  ;;  %p2404_p1 = scmp.lt.s32.totalorder %s2402_s17, %s2396_s23 }
 0x593   : > { %p2398_p12 = pnand %p2397_p11, %p2579_p5  ;;  %p2405_p2 = por %p2404_p1, %p2403_p0 }
 0x595   : > { %p2399_p13 = pneg %p2398_p12 }
 0x597   : > { %p2406_p3 = pnand %p2405_p2, %p2399_p13 }
 0x5f7   : > { %v1421_v49 = vpop.permute.xlu0 %1420 }
 0x5f8   : > { %v1419_v50 = vpop.permute.xlu1 %1418  ;;  %v1441_v55 = vsel %vm647_vm1, %v2095_v29, %v1421_v49  ;;  %v1602_v29 = vld [vmem:[%s3047_s9 + $0x40] sm:$0xff] }
 0x5f9   : > { %v1440_v53 = vsel %vm647_vm1, %v1164_v30, %v1419_v50  ;;  %v1604_v30 = vld [vmem:[%s3047_s9 + $0x50] sm:$0xff] }
 0x5fa   : > { %v2218_v31 = vpack.c.bf16 %v1604_v30, %v1602_v29  ;;  %v1761_v29 = vld [vmem:[%s3049_s11 + $0xc0] sm:$0xff]  ;;  %v1762_v30 = vld [vmem:[%s3049_s11 + $0xc8] sm:$0xff] }
 0x5fb   : > { %v1429_v51 = vpop.permute.xlu0 %1428 }
 0x5fc   : > { %v1427_v52 = vpop.permute.xlu1 %1426  ;;  %v1444_v58 = vsel %vm1442_vm5, %v1441_v55, %v1429_v51  ;;  %2219 = vmatpush1.bf16.msra.mxu1 %v2218_v31  ;;  %v2240_v31 = vpack.c.bf16 %v1762_v30, %v1761_v29 }
 0x5fd   : > { %v1443_v56 = vsel %vm1442_vm5, %v1440_v53, %v1427_v52  ;;  %2221 = vmatprep.subr.bf16.mxu1 %v2220_v35  ;;  %v1763_v35 = vld [vmem:[%s3049_s11 + $0xd0] sm:$0xff] }
 0x5ff   : > { %v1437_v54 = vpop.permute.xlu0 %1436 }
 0x600   : > { %v1435_v57 = vpop.permute.xlu1 %1434  ;;  %v1447_v62 = vsel %vm1445_vm6, %v1444_v58, %v1437_v54  ;;  %2223 = vmatpush1.bf16.msra.mxu1 %v2222_v37  ;;  %v1969_v54 = vld [vmem:[%s3045_s7] ss:$0 sm:$0xff]  ;;  %v2244_v37 = vpack.c.bf16 %v1764_v36, %v1763_v35 }
 0x601   : > { %v1446_v59 = vsel %vm1445_vm6, %v1443_v56, %v1435_v57  ;;  %v1970_v56 = vld [vmem:[%s3046_s8] ss:$0 sm:$0xff] }
 0x602   : > { %2133 = vmatprep.mubr.msk.f32.mxu0 %vm441_vm0, %v1446_v59 }
 0x603   : > { %2134 = vmatmul.mubr.msk.f32.vlgmr.msra.gmra.mrb[6].mxu0 %vm441_vm0, %v1447_v62 }
 0x6d6   : > { %v2135_v3 = vpop.f32.mrb[6].mxu0 }
 0x6d7   : > { %v1541_v4 = vadd.f32 %v2135_v3, %v1966_v63  ;;  %v1535_v13 = vpop.f32.mrb[7].mxu0 }
 0x6d8   : > { %v1536_v5 = vadd.f32 %v1966_v63, %v1535_v13  ;;  %v1753_v13 = vld [vmem:[%s3049_s11 + $0x80] sm:$0xff] }
 0x6d9   : > { %v2804_v6 = vadd.f32 %v1541_v4, %v2594_v0 }
 0x6da   : > { %v2807_v7 = vadd.f32 %v1536_v5, %v2596_v1  ;;  %v1754_v5 = vld [vmem:[%s3049_s11 + $0x88] sm:$0xff] }
 0x6db   : > { %v1549_v8 = vsel %vm441_vm0, %v2804_v6, 0.0  ;;  %v1555_v0 = vmul.f32 %v2804_v6, %v2804_v6 }
 0x6dc   : > { %1550 = vadd.xlane.f32.xlu0 %v1549_v8  ;;  %v1546_v9 = vsel %vm441_vm0, %v2807_v7, 0.0  ;;  %v1554_v10 = vmul.f32 %v2807_v7, %v2807_v7  ;;  %v2224_v8 = vpack.c.bf16 %v1754_v5, %v1753_v13 }
 0x6dd   : > { %1547 = vadd.xlane.f32.xlu1 %v1546_v9  ;;  %v1559_v1 = vsel %vm441_vm0, %v1555_v0, 0.0  ;;  %v1737_v9 = vld [vmem:[%s3049_s11] sm:$0xff]  ;;  %v1756_v0 = vld [vmem:[%s3049_s11 + $0x98] sm:$0xff] }
 0x6de   : > { %v1556_v11 = vsel %vm441_vm0, %v1554_v10, 0.0  ;;  %2225 = vmatprep.subr.bf16.mxu0 %v2224_v8 }
 0x6e0   : > { %1557 = vadd.xlane.f32.xlu0 %v1556_v11  ;;  %v1755_v11 = vld [vmem:[%s3049_s11 + $0x90] sm:$0xff] }
 0x6e4   : > { %1560 = vadd.xlane.f32.xlu0 %v1559_v1  ;;  %v2228_v1 = vpack.c.bf16 %v1756_v0, %v1755_v11 }
 0x769   : > { %v1551_v38 = vpop.xlane.xlu0 %1550 }
 0x76a   : > { %v1548_v39 = vpop.xlane.xlu1 %1547  ;;  %v1553_v43 = vmul.f32 0.015625, %v1551_v38  ;;  %v1747_v38 = vld [vmem:[%s3049_s11 + $0x50] sm:$0xff] }
 0x76b   : > { %v1552_v40 = vmul.f32 0.015625, %v1548_v39  ;;  %v1748_v39 = vld [vmem:[%s3049_s11 + $0x58] sm:$0xff] }
 0x76c   : > { %v1565_v47 = vmul.f32 %v1553_v43, %v1553_v43  ;;  %v1569_v57 = vsub.f32 %v2804_v6, %v1553_v43 }
 0x76d   : > { %v1564_v41 = vmul.f32 %v1552_v40, %v1552_v40  ;;  %v1558_v42 = vpop.xlane.xlu0 %1557  ;;  %v1568_v52 = vsub.f32 %v2807_v7, %v1552_v40  ;;  %v2246_v40 = vpack.c.bf16 %v1748_v39, %v1747_v38 }
 0x76e   : > { %v1562_v44 = vmul.f32 0.015625, %v1558_v42  ;;  %v1766_v42 = vld [vmem:[%s3049_s11 + $0xe8] sm:$0xff] }
 0x770   : > { %v1566_v45 = vsub.f32 %v1562_v44, %v1564_v41  ;;  %v1765_v41 = vld [vmem:[%s3049_s11 + $0xe0] sm:$0xff] }
 0x771   : > { %v1561_v46 = vpop.xlane.xlu0 %1560  ;;  %v2248_v43 = vpack.c.bf16 %v1766_v42, %v1765_v41  ;;  %v1749_v44 = vld [vmem:[%s3049_s11 + $0x60] sm:$0xff] }
 0x772   : > { %v1570_v48 = vadd.f32 1e-05, %v1566_v45  ;;  %v1563_v49 = vmul.f32 0.015625, %v1561_v46  ;;  %v1750_v45 = vld [vmem:[%s3049_s11 + $0x68] sm:$0xff] }
 0x773   : > { %v2250_v46 = vpack.c.bf16 %v1750_v45, %v1749_v44 }
 0x774   : > { %2376 = vrsqrt.f32 %v1570_v48  ;;  %v1567_v50 = vsub.f32 %v1563_v49, %v1565_v47  ;;  %v1767_v47 = vld [vmem:[%s3049_s11 + $0xf0] sm:$0xff]  ;;  %v1768_v48 = vld [vmem:[%s3049_s11 + $0xf8] sm:$0xff] }
 0x775   : > { %v2252_v49 = vpack.c.bf16 %v1768_v48, %v1767_v47 }
 0x776   : > { %v1571_v51 = vadd.f32 1e-05, %v1567_v50  ;;  %v1751_v50 = vld [vmem:[%s3049_s11 + $0x70] sm:$0xff] }
 0x778   : > { %2378 = vrsqrt.f32 %v1571_v51  ;;  %v1752_v51 = vld [vmem:[%s3049_s11 + $0x78] sm:$0xff] }
 0x77e   : > { %v2377_v53 = vpop.eup %2376 }
 0x77f   : > { %v1574_v55 = vmul.f32 %v2377_v53, %v1568_v52  ;;  %v2254_v52 = vpack.c.bf16 %v1752_v51, %v1751_v50  ;;  %v1610_v53 = vld [vmem:[%s3048_s10] sm:$0x3] }
 0x781   : > { %v1583_v58 = vmul.f32 %v1969_v54, %v1574_v55  ;;  %v1619_v55 = vrot.slane %v1610_v53, %v515_v2 }
 0x782   : > { %v2379_v59 = vpop.eup %2378 }
 0x783   : > { %v1592_v62 = vadd.f32 %v1970_v56, %v1583_v58  ;;  %v1575_v63 = vmul.f32 %v2379_v59, %v1569_v57 }
 0x785   : > { %1971 = vmatmul.mubr.msk.f32.vlgmr.msra.gmra.mrb[14].mxu1 %vm441_vm0, %v1592_v62  ;;  %v1584_v3 = vmul.f32 %v1969_v54, %v1575_v63  ;;  %v1615_v54 = vrot.slane %v1610_v53, %v511_v61 }
 0x786   : > { %1698 = vmatprep.mubr.f32.mxu1 %v2460_v21  ;;  %v1738_v21 = vld [vmem:[%s3049_s11 + $0x8] sm:$0xff] }
 0x787   : > { %v1593_v4 = vadd.f32 %v1970_v56, %v1584_v3  ;;  %v2226_v10 = vpack.c.bf16 %v1738_v21, %v1737_v9 }
 0x789   : > { %1972 = vmatmul.mubr.msk.f32.gmra.mrb[16].mxu1 %vm441_vm0, %v1593_v4  ;;  %2227 = vmatpush3.bf16.msra.mxu0 %v2226_v10 }
 0x78a   : > { %2229 = vmatprep.subr.bf16.mxu0 %v2228_v1 }
 0x78d   : > { %2231 = vmatpush3.bf16.msra.mxu0 %v2230_v15 }
 0x78e   : > { %2233 = vmatprep.subr.bf16.mxu0 %v2232_v18 }
 0x791   : > { %2235 = vmatpush3.bf16.msra.mxu0 %v2234_v22 }
 0x792   : > { %2237 = vmatprep.subr.bf16.mxu0 %v2236_v25 }
 0x795   : > { %2239 = vmatpush3.bf16.msra.mxu0 %v2238_v28 }
 0x796   : > { %2241 = vmatprep.subr.bf16.mxu0 %v2240_v31  ;;  %v1973_v31 = vld [vmem:[%s3050_s12] ss:$0 sm:$0xff] }
 0x799   : > { %2243 = vmatpush3.bf16.msra.mxu0 %v2242_v34 }
 0x79a   : > { %2245 = vmatprep.subr.bf16.mxu0 %v2244_v37 }
 0x79d   : > { %2247 = vmatpush3.bf16.msra.mxu0 %v2246_v40 }
 0x79e   : > { %2249 = vmatprep.subr.bf16.mxu0 %v2248_v43 }
 0x7a1   : > { %2251 = vmatpush3.bf16.msra.mxu0 %v2250_v46 }
 0x7a2   : > { %2253 = vmatprep.subr.bf16.mxu0 %v2252_v49 }
 0x7a5   : > { %2255 = vmatpush3.bf16.msra.mxu0 %v2254_v52 }
 0x858   : > { %v1694_v56 = vpop.f32.mrb[14].mxu1 }
 0x859   : > { %v1695_v57 = vadd.f32 %v1694_v56, %v1615_v54  ;;  %v1696_v58 = vpop.f32.mrb[15].mxu1 }
 0x85a   : > { %v1697_v59 = vadd.f32 %v1696_v58, %v1619_v55 }
 0x85b   : > { %v1705_v62 = vmul.f32 1.702, %v1695_v57 }
 0x85c   : > { %v1706_v63 = vmul.f32 1.702, %v1697_v59  ;;  %v1700_v3 = vpop.f32.mrb[16].mxu1 }
 0x85d   : > { %v1709_v4 = vsub.f32 0.0, %v1705_v62  ;;  %v1701_v13 = vadd.f32 %v1700_v3, %v1615_v54  ;;  %v1702_v5 = vpop.f32.mrb[17].mxu1 }
 0x85e   : > { %v1710_v8 = vsub.f32 0.0, %v1706_v63  ;;  %v1703_v9 = vadd.f32 %v1702_v5, %v1619_v55 }
 0x85f   : > { %v1713_v21 = vmul.f32 1.442695, %v1709_v4  ;;  %v1707_v10 = vmul.f32 1.702, %v1701_v13 }
 0x860   : > { %v1715_v11 = vmul.f32 1.442695, %v1710_v8  ;;  %v1708_v0 = vmul.f32 1.702, %v1703_v9 }
 0x861   : > { %2380 = vpow2.f32 %v1713_v21  ;;  %v1711_v61 = vsub.f32 0.0, %v1707_v10 }
 0x862   : > { %2382 = vpow2.f32 %v1715_v11  ;;  %v1712_v60 = vsub.f32 0.0, %v1708_v0 }
 0x863   : > { %v1717_v2 = vmul.f32 1.442695, %v1711_v61 }
 0x864   : > { %v1719_v1 = vmul.f32 1.442695, %v1712_v60 }
 0x865   : > { %2384 = vpow2.f32 %v1717_v2 }
 0x866   : > { %2386 = vpow2.f32 %v1719_v1 }
 0x86b   : > { %v2381_v12 = vpop.eup %2380 }
 0x86c   : > { %v2383_v14 = vpop.eup %2382  ;;  %v1721_v15 = vadd.f32 1.0, %v2381_v12 }
 0x86d   : > { %v1722_v16 = vadd.f32 1.0, %v2383_v14 }
 0x86e   : > { %2388 = vrcp.f32 %v1721_v15 }
 0x86f   : > { %v2385_v17 = vpop.eup %2384  ;;  %2390 = vrcp.f32 %v1722_v16 }
 0x870   : > { %v2387_v18 = vpop.eup %2386  ;;  %v1723_v19 = vadd.f32 1.0, %v2385_v17 }
 0x871   : > { %v1724_v20 = vadd.f32 1.0, %v2387_v18 }
 0x872   : > { %2392 = vrcp.f32 %v1723_v19 }
 0x873   : > { %2394 = vrcp.f32 %v1724_v20 }
 0x878   : > { %v2389_v22 = vpop.eup %2388 }
 0x879   : > { %v2391_v23 = vpop.eup %2390  ;;  %v1733_v25 = vmul.f32 %v2389_v22, %v1695_v57 }
 0x87a   : > { %v1734_v24 = vmul.f32 %v2391_v23, %v1697_v59 }
 0x87c   : > { %v2393_v26 = vpop.eup %2392  ;;  %1840 = vmatprep.mubr.f32.mxu0 %v1734_v24 }
 0x87d   : > { %v2395_v27 = vpop.eup %2394  ;;  %1841 = vmatmul.mubr.f32.vlgmr.msra.gmra.mrb[8].mxu0 %v1733_v25  ;;  %v1735_v29 = vmul.f32 %v2393_v26, %v1701_v13 }
 0x87e   : > { %v1736_v28 = vmul.f32 %v2395_v27, %v1703_v9 }
 0x880   : > { %1845 = vmatprep.mubr.f32.mxu0 %v1736_v28 }
 0x881   : > { %1846 = vmatmul.mubr.f32.gmra.mrb[10].mxu0 %v1735_v29 }
 0x950   : > { %v2055_v30 = vpop.f32.mrb[8].mxu0 }
 0x951   : > { %v2056_v32 = vpop.f32.mrb[9].mxu0 }
 0x952   : > { %v2057_v33 = vadd.f32 %v2056_v32, %v2055_v30 }
 0x954   : > { %v1843_v34 = vadd.f32 %v2057_v33, %v1973_v31  ;;  %v2058_v35 = vpop.f32.mrb[10].mxu0 }
 0x955   : > { %v2059_v36 = vpop.f32.mrb[11].mxu0 }
 0x956   : > { %v1851_v37 = vadd.f32 %v1843_v34, %v2807_v7  ;;  %v2060_v38 = vadd.f32 %v2059_v36, %v2058_v35 }
 0x958   : > { %1853 = vst.msk [vmem:[%s433_s30] sm:$0xff] %vm441_vm0, %v1851_v37  ;;  %v1848_v39 = vadd.f32 %v2060_v38, %v1973_v31 }
 0x95a   : > { %v1852_v40 = vadd.f32 %v1848_v39, %v2804_v6 }
 0x95c   : > { %1854 = vst.msk [vmem:[%s433_s30 + $0x8] sm:$0xff] %vm441_vm0, %v1852_v40 }
 0x95d   : > { %2409 = shalt.err (!%p2406_p3)
}
 0x95e   : > { %s2410_s22 = scalar_lea.hbm %s2991_s21, 256  ;;  %s2414_s20 = scalar_lea.hbm %s3051_s13, 512 }
 0x95f   : > { %p2411_p4 = scmp.ne.s32.totalorder %s2991_s21, %s2410_s22  ;;  %p2415_p9 = scmp.lt.u32.totalorder %s2991_s21, %s3051_s13 }
 0x960   : > { %p2416_p10 = scmp.lt.u32.totalorder %s2414_s20, %s2410_s22  ;;  %p2418_p12 = scmp.lt.u32.totalorder %s2410_s22, %s2991_s21 }
 0x961   : > { %p2412_p7 = pnand %p2411_p4, %p2579_p5 }
 0x962   : > { %p2417_p11 = por %p2416_p10, %p2415_p9 }
 0x963   : > { %p2413_p8 = pneg %p2412_p7 }
 0x964   : > { %p2419_p13 = por %p2418_p12, %p2417_p11 }
 0x966   : > { %p2420_p0 = pnand %p2419_p13, %p2413_p8 }
 0x968   : > { %2423 = shalt.err (!%p2420_p0)
}
 0x969   : > { %s2469_s23 = smov 128   ;;  %s2470_s17 = smov 8  }
 0x96a   : > { %2256 = dma.vmem_to_hbm [thread:$0]  (%p2579_p5), %s2993_s15, 256, %s2991_s21, %s2997_s29, %s2469_s23, %s2469_s23, %s2470_s17  }
 0x96b PF: > { %p2262_p1 = scmp.ge.s32.totalorder %s2458_s28, 2  ;;  %s1884_s30 = sand.u32 1, %s2446_s25  }
 0x96c   : > { %s1885_s22 = scalar_lea.sflag [#allocation3], %s1884_s30 }
 0x96d   : > { %p2259_p2 = pnand %p2262_p1, %p2583_p6 }
 0x96f   : > { %2441 = dma.done.wait (!%p2259_p2), %s1885_s22, 256  }
 0x970   : > { %2443 = vsyncadd (!%p2259_p2), %s1885_s22, 4294967040  ;;  %s3059_s16 = sld [smem:[#allocation5_spill]]  ;;  %p23_p3 = scmp.ge.s32.totalorder %s2566_s14, 4  }
 0x971   : > { %s3060_s25 = smov %s2450_s26  ;;  %s3061_s26 = smov %s2454_s27 }
 0x972   : > { %s3063_s28 = smov %s2566_s14  ;;  %25 = sbr.rel (!%p23_p3) target bundleno = 5 (0x5), region = 107 }
 0x976   : > { %s3062_s27 = smov %s3059_s16 }
 0x979   :  { %1890 = vsyncpa [#allocation3], 1 }
 0x97a   :  { %1892 = vsyncpa [#allocation3 + $0x1], 1 }

// kernel: tpu_custom_call.1
= control target key start
LH: loop header
LB: loop body
LE: loop exit
PB: predicated region body
PF: predicated region fallthrough
CT: control target
= control target key end

     0   :  { %s3038_s0 = inlined_call_operand.vmem [shape: f32[2,16,64], index: 0, kind: input, shape index: {}]   ;;  %s3039_s1 = inlined_call_operand.vmem [shape: f32[1,64], index: 1, kind: input, shape index: {}]   ;;  %s3040_s2 = inlined_call_operand.vmem [shape: f32[1,64], index: 2, kind: input, shape index: {}]   ;;  %s3041_s3 = inlined_call_operand.vmem [shape: f32[64,192], index: 3, kind: input, shape index: {}]   ;;  %s3042_s4 = inlined_call_operand.vmem [shape: f32[1,192], index: 4, kind: input, shape index: {}]   ;;  %s3043_s5 = inlined_call_operand.vmem [shape: f32[64,64], index: 5, kind: input, shape index: {}]   ;;  %s3044_s6 = inlined_call_operand.vmem [shape: f32[1,64], index: 6, kind: input, shape index: {}]   ;;  %s3045_s7 = inlined_call_operand.vmem [shape: f32[1,64], index: 7, kind: input, shape index: {}]   ;;  %s3046_s8 = inlined_call_operand.vmem [shape: f32[1,64], index: 8, kind: input, shape index: {}]   ;;  %s3047_s9 = inlined_call_operand.vmem [shape: f32[64,256], index: 9, kind: input, shape index: {}]   ;;  %s3048_s10 = inlined_call_operand.vmem [shape: f32[1,256], index: 10, kind: input, shape index: {}]   ;;  %s3049_s11 = inlined_call_operand.vmem [shape: f32[256,64], index: 11, kind: input, shape index: {}]   ;;  %s3050_s12 = inlined_call_operand.vmem [shape: f32[1,64], index: 12, kind: input, shape index: {}]   ;;  %s3051_s13 = inlined_call_operand.hbm [shape: f32[2,16,64], index: 13, kind: output, shape index: {}]  }
   0x1   :  { %3052 = sst [smem:[#allocation6_spill]] %s3038_s0 }
   0x2   :  { %18 = vsyncpa [#allocation3], 0 }
   0x3   :  { %20 = vsyncpa [#allocation3 + $0x1], 0  ;;  %s2541_s25 = smov 0   ;;  %s2543_s26 = smov 0  }
   0x4   :  { %s2545_s27 = smov 0   ;;  %s2547_s28 = smov 0  }
   0x5 LB: > { %s2562_s29 = sadd.s32 4294967295, %s2458_s28   ;;  %s1931_s30 = sadd.s32 4294967294, %s2458_s28   ;;  %s2458_s28 = sphi %s2547_s28, %s3063_s28   ;;  %s2454_s27 = sphi %s2545_s27, %s3062_s27   ;;  %s2450_s26 = sphi %s2543_s26, %s3061_s26   ;;  %s2446_s25 = sphi %s2541_s25, %s3060_s25  }
   0x6   : > { %s2566_s14 = sadd.s32 1, %s2458_s28   ;;  %s311_s15 = sadd.s32 1, %s2454_s27 }
   0x7   : > { %s308_s16 = ssub.s32 %s2458_s28, %s2566_s14  ;;  %p321_p0 = scmp.ne.s32.totalorder %s2454_s27, %s2450_s26 }
   0x8   : > { %p309_p1 = scmp.eq.s32.totalorder %s308_s16, 0  ;;  %p322_p2 = scmp.eq.s32.totalorder %s2562_s29, 1 }
   0x9   : > { %p327_p3 = scmp.ne.s32.totalorder %s2450_s26, %s2446_s25  ;;  %p328_p4 = scmp.eq.s32.totalorder %s1931_s30, 1 }
   0xa   : > { %s2577_s17 = scalar_select %p309_p1, %s2454_s27, %s311_s15  }
   0xb   : > { %p2579_p5 = por %p322_p2, %p321_p0  ;;  %p2583_p6 = por %p328_p4, %p327_p3 }
   0xc   : > { %3053 = sst [smem:[#allocation5_spill]] %s2577_s17  ;;  %p1934_p7 = scmp.ge.s32.totalorder %s2458_s28, 1 }
   0xd   : > { %p390_p8 = scmp.lt.s32.totalorder %s2458_s28, 3 }
   0xf   : > { %p391_p9 = pnand %p1934_p7, %p390_p8 }
  0x10   : > { %p434_p10 = scmp.lt.s32.totalorder (!%p391_p9), %s2562_s29, 1  ;;  %vm441_vm0 = vcmask (!%p391_p9), 523264   ;;  %s3056_s0 = sld [smem:[#allocation6_spill]] (!%p391_p9)  ;;  %v492_v8 = vld [vmem:[%s3041_s3 + $0x8] sm:$0xff] (!%p391_p9)  ;;  %v494_v9 = vld [vmem:[%s3041_s3 + $0x18] sm:$0xff] (!%p391_p9)  ;;  %v491_v11 = vld [vmem:[%s3041_s3] sm:$0xff] (!%p391_p9)  ;;  %v509_v59 = vlaneseq (!%p391_p9) }
  0x11   : > { %394 = sbr.rel (%p391_p9) target bundleno = 2411 (0x96b), region = 72  ;;  %v2136_v10 = vpack.c.bf16 (!%p391_p9), %v494_v9, %v492_v8  ;;  %v493_v12 = vld [vmem:[%s3041_s3 + $0x10] sm:$0xff] (!%p391_p9)  ;;  %v496_v14 = vld [vmem:[%s3041_s3 + $0x28] sm:$0xff] (!%p391_p9)  ;;  %v498_v15 = vld [vmem:[%s3041_s3 + $0x38] sm:$0xff] (!%p391_p9)  ;;  %v2460_v21 = vmov (!%p391_p9), 0.0   ;;  %vm647_vm1 = vcmask (!%p391_p9), 130048  }
  0x12   : > { %v2138_v13 = vpack.c.bf16 (!%p391_p9), %v493_v12, %v491_v11  ;;  %v495_v16 = vld [vmem:[%s3041_s3 + $0x20] sm:$0xff] (!%p391_p9)  ;;  %v2140_v17 = vpack.c.bf16 (!%p391_p9), %v498_v15, %v496_v14  ;;  %v497_v18 = vld [vmem:[%s3041_s3 + $0x30] sm:$0xff] (!%p391_p9)  ;;  %v500_v19 = vld [vmem:[%s3041_s3 + $0x48] sm:$0xff] (!%p391_p9)  ;;  %589 = vmatprep.mubr.f32.mxu1 (!%p391_p9), %v2460_v21  ;;  %v2669_v60 = vshrl.u32 (!%p391_p9), %v509_v59, 7  ;;  %s2462_s17 = smov (!%p391_p9), 112   ;;  %s2463_s30 = smov (!%p391_p9), 80  }
  0x13   : > { %2137 = vmatprep.subr.bf16.mxu1 (!%p391_p9), %v2136_v10  ;;  %v502_v20 = vld [vmem:[%s3041_s3 + $0x58] sm:$0xff] (!%p391_p9)  ;;  %v2142_v22 = vpack.c.bf16 (!%p391_p9), %v497_v18, %v495_v16  ;;  %v499_v24 = vld [vmem:[%s3041_s3 + $0x40] sm:$0xff] (!%p391_p9)  ;;  %v501_v25 = vld [vmem:[%s3041_s3 + $0x50] sm:$0xff] (!%p391_p9)  ;;  %s2464_s15 = smov (!%p391_p9), 64   ;;  %vm1442_vm5 = vcmask (!%p391_p9), 261120   ;;  %vm1445_vm6 = vcmask (!%p391_p9), 392192  }
  0x14   : > { %2139 = vmatpush1.bf16.msra.mxu1 (!%p391_p9), %v2138_v13  ;;  %v2144_v23 = vpack.c.bf16 (!%p391_p9), %v502_v20, %v500_v19  ;;  %v504_v26 = vld [vmem:[%s3041_s3 + $0x68] sm:$0xff] (!%p391_p9)  ;;  %v506_v27 = vld [vmem:[%s3041_s3 + $0x78] sm:$0xff] (!%p391_p9)  ;;  %v2146_v28 = vpack.c.bf16 (!%p391_p9), %v501_v25, %v499_v24  ;;  %v503_v30 = vld [vmem:[%s3041_s3 + $0x60] sm:$0xff] (!%p391_p9)  ;;  %v511_v61 = vsub.s32 (!%p391_p9), 0, %v2669_v60  ;;  %s431_s22 = sand.u32 (!%p391_p9), 1, %s2450_s26  }
  0x15   : > { %2141 = vmatprep.subr.bf16.mxu1 (!%p391_p9), %v2140_v17  ;;  %v2148_v29 = vpack.c.bf16 (!%p391_p9), %v506_v27, %v504_v26  ;;  %v505_v31 = vld [vmem:[%s3041_s3 + $0x70] sm:$0xff] (!%p391_p9)  ;;  %v1938_v51 = vld [vmem:[%s3039_s1] ss:$0 sm:$0xff] (!%p391_p9)  ;;  %vm2692_vm2 = vmpackc.low (!%p391_p9), %vm647_vm1, %vm647_vm1 }
  0x16   : > { %v2150_v32 = vpack.c.bf16 (!%p391_p9), %v505_v31, %v503_v30  ;;  %v1939_v54 = vld [vmem:[%s3040_s2] ss:$0 sm:$0xff] (!%p391_p9) }
  0x17   : > { %v507_v62 = vld [vmem:[%s3042_s4] sm:$0x3] (!%p391_p9) }
  0x18   : > { %s435_s20 = scalar_select %p434_p10, %s2562_s29, 1  ;;  %2143 = vmatpush1.bf16.msra.mxu1 %v2142_v22  ;;  %v512_v63 = vrot.slane %v507_v62, %v511_v61 }
  0x19   : > { %2145 = vmatprep.subr.bf16.mxu1 %v2144_v23 }
  0x1a   : > { %s1979_s21 = sshll.u32 %s435_s20, 4 }
  0x1b   : > { %s438_s24 = scalar_lea.vmem %s3056_s0, %s1979_s21  ;;  %s2461_s0 = smov 96  }
  0x1c   : > { %v2594_v0 = vld [vmem:[%s438_s24 + $0x8] sm:$0xff]  ;;  %v2596_v1 = vld [vmem:[%s438_s24] sm:$0xff]  ;;  %2147 = vmatpush1.bf16.msra.mxu1 %v2146_v28  ;;  %s2468_s24 = smov [#allocation2]  }
  0x1d   : > { %v445_v2 = vsel %vm441_vm0, %v2594_v0, 0.0  ;;  %v442_v3 = vsel %vm441_vm0, %v2596_v1, 0.0  ;;  %v452_v4 = vmul.f32 %v2594_v0, %v2594_v0  ;;  %v451_v5 = vmul.f32 %v2596_v1, %v2596_v1  ;;  %2149 = vmatprep.subr.bf16.mxu1 %v2148_v29 }
  0x1e   : > { %446 = vadd.xlane.f32.xlu1 %v445_v2  ;;  %443 = vadd.xlane.f32.xlu0 %v442_v3  ;;  %v515_v2 = vsub.s32 1, %v2669_v60 }
  0x1f   : > { %v456_v6 = vsel %vm441_vm0, %v452_v4, 0.0  ;;  %v453_v7 = vsel %vm441_vm0, %v451_v5, 0.0 }
  0x20   : > { %2151 = vmatpush1.bf16.msra.mxu1 %v2150_v32 }
  0x22   : > { %457 = vadd.xlane.f32.xlu1 %v456_v6  ;;  %454 = vadd.xlane.f32.xlu0 %v453_v7  ;;  %v516_v6 = vrot.slane %v507_v62, %v515_v2 }
  0xab   : > { %v447_v33 = vpop.xlane.xlu1 %446  ;;  %v444_v34 = vpop.xlane.xlu0 %443 }
  0xac   : > { %v450_v35 = vmul.f32 0.015625, %v447_v33  ;;  %v449_v36 = vmul.f32 0.015625, %v444_v34 }
  0xae   : > { %v462_v37 = vmul.f32 %v450_v35, %v450_v35  ;;  %v461_v40 = vmul.f32 %v449_v36, %v449_v36  ;;  %v466_v48 = vsub.f32 %v2594_v0, %v450_v35  ;;  %v465_v49 = vsub.f32 %v2596_v1, %v449_v36 }
  0xaf   : > { %v458_v38 = vpop.xlane.xlu1 %457  ;;  %v455_v39 = vpop.xlane.xlu0 %454 }
  0xb0   : > { %v460_v41 = vmul.f32 0.015625, %v458_v38  ;;  %v459_v42 = vmul.f32 0.015625, %v455_v39 }
  0xb2   : > { %v464_v43 = vsub.f32 %v460_v41, %v462_v37  ;;  %v463_v44 = vsub.f32 %v459_v42, %v461_v40  ;;  %v638_v42 = vadd.s32 8, %v2669_v60 }
  0xb4   : > { %v468_v45 = vadd.f32 1e-05, %v464_v43  ;;  %v467_v46 = vadd.f32 1e-05, %v463_v44  ;;  %v640_v43 = vand.u32 127, %v509_v59 }
  0xb6   : > { %2340 = vrsqrt.f32 %v468_v45  ;;  %vm642_vm3 = vcmp.gt.s32.totalorder %v640_v43, %v638_v42  ;;  %vm641_vm4 = vcmp.gt.s32.totalorder %v640_v43, %v2669_v60 }
  0xb7   : > { %2342 = vrsqrt.f32 %v467_v46 }
  0xc0   : > { %v2341_v47 = vpop.eup %2340 }
  0xc1   : > { %v2343_v50 = vpop.eup %2342  ;;  %v472_v53 = vmul.f32 %v2341_v47, %v466_v48 }
  0xc2   : > { %v471_v52 = vmul.f32 %v2343_v50, %v465_v49 }
  0xc3   : > { %v481_v57 = vmul.f32 %v1938_v51, %v472_v53 }
  0xc4   : > { %v480_v55 = vmul.f32 %v1938_v51, %v471_v52 }
  0xc5   : > { %v490_v58 = vadd.f32 %v1939_v54, %v481_v57 }
  0xc6   : > { %v489_v56 = vadd.f32 %v1939_v54, %v480_v55 }
  0xc8   : > { %1940 = vmatmul.mubr.msk.f32.vlgmr.msra.gmra.mrb[0].mxu1 %vm441_vm0, %v489_v56 }
  0xc9   : > { %595 = vmatprep.mubr.f32.mxu1 %v2460_v21 }
  0xcc   : > { %1941 = vmatmul.mubr.msk.f32.gmra.mrb[2].mxu1 %vm441_vm0, %v490_v58 }
 0x19b   : > { %v591_v3 = vpop.f32.mrb[0].mxu1 }
 0x19c   : > { %v592_v4 = vadd.f32 %v591_v3, %v512_v63  ;;  %v593_v5 = vpop.f32.mrb[1].mxu1 }
 0x19d   : > { %v594_v10 = vadd.f32 %v593_v5, %v516_v6 }
 0x19e   : > { %608 = vrot.lane.b32.xlu1 %v592_v4, %s2461_s0  ;;  %604 = vrot.lane.b32.xlu0 %v592_v4, %s2462_s17 }
 0x19f   : > { %2065 = vmatprep.mubr.msk.f32.mxu1 %vm647_vm1, %v592_v4  ;;  %v597_v7 = vpop.f32.mrb[2].mxu1 }
 0x1a0   : > { %v598_v8 = vadd.f32 %v597_v7, %v512_v63  ;;  %v599_v9 = vpop.f32.mrb[3].mxu1 }
 0x1a1   : > { %v600_v11 = vadd.f32 %v599_v9, %v516_v6 }
 0x1a2   : > { %606 = vrot.lane.b32.xlu1 %v598_v8, %s2462_s17  ;;  %612 = vrot.lane.b32.xlu0 %v592_v4, %s2463_s30  ;;  %v2305_v14 = vpack.i.bf16 %v598_v8, %v592_v4 }
 0x1a3   : > { %v2176_v12 = vpack.c.bf16 %v600_v11, %v594_v10  ;;  %v2685_v13 = vpack.i.bf16 %v600_v11, %v594_v10 }
 0x1a6   : > { %610 = vrot.lane.b32.xlu1 %v598_v8, %s2461_s0  ;;  %2306 = vrot.lane.b32.xlu0 %v2305_v14, %s2464_s15 }
 0x1aa   : > { %614 = vrot.lane.b32.xlu1 %v598_v8, %s2463_s30 }
 0x210   : > { %v609_v15 = vpop.permute.xlu1 %608  ;;  %v605_v16 = vpop.permute.xlu0 %604 }
 0x211   : > { %2079 = vmatprep.mubr.msk.f32.mxu0 %vm647_vm1, %v609_v15 }
 0x214   : > { %v607_v17 = vpop.permute.xlu1 %606  ;;  %v613_v18 = vpop.permute.xlu0 %612 }
 0x215   : > { %v2310_v19 = vpack.i.bf16 %v607_v17, %v605_v16 }
 0x217   : > { %2311 = vrot.lane.b32.xlu1 %v2310_v19, %s2464_s15 }
 0x218   : > { %v611_v20 = vpop.permute.xlu1 %610  ;;  %v2307_v22 = vpop.permute.xlu0 %2306 }
 0x219   : > { %v2315_v23 = vpack.i.bf16 %v611_v20, %v609_v15  ;;  %v2309_v24 = vunpack.i.h.bf16 %v2307_v22  ;;  %v2308_v25 = vunpack.i.l.bf16 %v2307_v22 }
 0x21b   : > { %v2152_v27 = vpack.c.bf16 %v2309_v24, %v2308_v25  ;;  %2316 = vrot.lane.b32.xlu0 %v2315_v23, %s2464_s15 }
 0x21c   : > { %v615_v28 = vpop.permute.xlu1 %614 }
 0x21d   : > { %v2320_v29 = vpack.i.bf16 %v615_v28, %v613_v18  ;;  %2154 = vmatprep.subr.msk.bf16.mxu1 %vm2692_vm2, %v2152_v27 }
 0x21e   : > { %2157 = vmatpush3.bf16.xpose.msk.msra.mxu1 %vm2692_vm2, %v2152_v27 }
 0x21f   : > { %2321 = vrot.lane.b32.xlu1 %v2320_v29, %s2464_s15 }
 0x225   : > { %2066 = vmatmul.mubr.msk.f32.vlgmr.msra.gmra.mrb[4].mxu1 %vm647_vm1, %v598_v8 }
 0x226   : > { %2072 = vmatprep.mubr.msk.f32.mxu1 %vm647_vm1, %v605_v16 }
 0x289   : > { %v2312_v30 = vpop.permute.xlu1 %2311 }
 0x28a   : > { %v2314_v31 = vunpack.i.h.bf16 %v2312_v30  ;;  %v2313_v32 = vunpack.i.l.bf16 %v2312_v30 }
 0x28c   : > { %v2158_v33 = vpack.c.bf16 %v2314_v31, %v2313_v32 }
 0x28d   : > { %v2317_v34 = vpop.permute.xlu0 %2316 }
 0x28e   : > { %v2319_v35 = vunpack.i.h.bf16 %v2317_v34  ;;  %v2318_v36 = vunpack.i.l.bf16 %v2317_v34  ;;  %2160 = vmatprep.subr.msk.bf16.mxu1 %vm2692_vm2, %v2158_v33 }
 0x28f   : > { %2163 = vmatpush3.bf16.xpose.msk.msra.mxu1 %vm2692_vm2, %v2158_v33 }
 0x290   : > { %v2164_v37 = vpack.c.bf16 %v2319_v35, %v2318_v36 }
 0x291   : > { %v2322_v38 = vpop.permute.xlu1 %2321 }
 0x292   : > { %v2324_v39 = vunpack.i.h.bf16 %v2322_v38  ;;  %v2323_v40 = vunpack.i.l.bf16 %v2322_v38  ;;  %2166 = vmatprep.subr.msk.bf16.mxu0 %vm2692_vm2, %v2164_v37 }
 0x293   : > { %2169 = vmatpush3.bf16.xpose.msk.msra.mxu0 %vm2692_vm2, %v2164_v37 }
 0x294   : > { %v2170_v41 = vpack.c.bf16 %v2324_v39, %v2323_v40  ;;  %2177 = vmatprep.subr.bf16.mxu0 %v2176_v12 }
 0x296   : > { %2073 = vmatmul.mubr.msk.f32.vlgmr.msra.gmra.mrb[6].mxu1 %vm647_vm1, %v607_v17  ;;  %2172 = vmatprep.subr.msk.bf16.mxu1 %vm2692_vm2, %v2170_v41 }
 0x297   : > { %2175 = vmatpush3.bf16.xpose.msk.msra.mxu1 %vm2692_vm2, %v2170_v41  ;;  %2086 = vmatprep.mubr.msk.f32.mxu1 %vm647_vm1, %v613_v18 }
 0x29a   : > { %2080 = vmatmul.mubr.msk.f32.vlgmr.msra.gmra.mrb[0].mxu0 %vm647_vm1, %v611_v20 }
 0x29b   : > { %2179 = vmatpush3.bf16.msra.mxu0 %v2176_v12 }
 0x29e   : > { %2087 = vmatmul.mubr.msk.f32.vlgmr.msra.gmra.mrb[8].mxu1 %vm647_vm1, %v615_v28 }
 0x2f8   : > { %v2067_v44 = vpop.f32.mrb[4].mxu1 }
 0x2f9   : > { %v997_v45 = vsel %vm642_vm3, -1e+30, %v2067_v44  ;;  %v722_v46 = vpop.f32.mrb[5].mxu1 }
 0x2fa   : > { %v996_v47 = vsel %vm641_vm4, -1e+30, %v722_v46  ;;  %v1007_v48 = vsel %vm647_vm1, %v997_v45, -inf }
 0x2fb   : > { %1008 = vmax.xlane.f32.xlu1 %v1007_v48  ;;  %v1004_v49 = vsel %vm647_vm1, %v996_v47, -inf }
 0x2fc   : > { %1005 = vmax.xlane.f32.xlu0 %v1004_v49 }
 0x369   : > { %v2074_v50 = vpop.f32.mrb[6].mxu1 }
 0x36a   : > { %v999_v51 = vsel %vm642_vm3, -1e+30, %v2074_v50  ;;  %v809_v52 = vpop.f32.mrb[7].mxu1 }
 0x36b   : > { %v1013_v53 = vsel %vm647_vm1, %v999_v51, -inf  ;;  %v998_v54 = vsel %vm641_vm4, -1e+30, %v809_v52 }
 0x36c   : > { %1014 = vmax.xlane.f32.xlu0 %v1013_v53  ;;  %v1010_v59 = vsel %vm647_vm1, %v998_v54, -inf }
 0x36d   : > { %v2081_v55 = vpop.f32.mrb[0].mxu0 }
 0x36e   : > { %v1001_v56 = vsel %vm642_vm3, -1e+30, %v2081_v55  ;;  %v896_v57 = vpop.f32.mrb[1].mxu0 }
 0x36f   : > { %v1019_v58 = vsel %vm647_vm1, %v1001_v56, -inf  ;;  %v1000_v62 = vsel %vm641_vm4, -1e+30, %v896_v57 }
 0x370   : > { %1020 = vmax.xlane.f32.xlu1 %v1019_v58  ;;  %1011 = vmax.xlane.f32.xlu0 %v1010_v59  ;;  %v1016_v5 = vsel %vm647_vm1, %v1000_v62, -inf }
 0x371   : > { %v2088_v63 = vpop.f32.mrb[8].mxu1 }
 0x372   : > { %v1003_v3 = vsel %vm642_vm3, -1e+30, %v2088_v63  ;;  %v983_v4 = vpop.f32.mrb[9].mxu1 }
 0x373   : > { %v1025_v6 = vsel %vm647_vm1, %v1003_v3, -inf  ;;  %v1002_v7 = vsel %vm641_vm4, -1e+30, %v983_v4 }
 0x374   : > { %1017 = vmax.xlane.f32.xlu0 %v1016_v5  ;;  %1026 = vmax.xlane.f32.xlu1 %v1025_v6  ;;  %v1022_v8 = vsel %vm647_vm1, %v1002_v7, -inf }
 0x378   : > { %1023 = vmax.xlane.f32.xlu0 %v1022_v8 }
 0x388   : > { %v1009_v9 = vpop.xlane.xlu1 %1008 }
 0x389   : > { %v1029_v10 = vsub.f32 %v997_v45, %v1009_v9  ;;  %v1006_v11 = vpop.xlane.xlu0 %1005 }
 0x38a   : > { %v1028_v12 = vsub.f32 %v996_v47, %v1006_v11 }
 0x38b   : > { %v1038_v14 = vmul.f32 1.442695, %v1029_v10 }
 0x38c   : > { %v1036_v15 = vmul.f32 1.442695, %v1028_v12 }
 0x38d   : > { %2344 = vpow2.f32 %v1038_v14 }
 0x38e   : > { %2346 = vpow2.f32 %v1036_v15 }
 0x397   : > { %v2345_v16 = vpop.eup %2344 }
 0x398   : > { %v2347_v17 = vpop.eup %2346  ;;  %v1055_v18 = vsel %vm647_vm1, %v2345_v16, 0.0 }
 0x399   : > { %1056 = vadd.xlane.f32.xlu1 %v1055_v18  ;;  %v1052_v19 = vsel %vm647_vm1, %v2347_v17, 0.0 }
 0x39a   : > { %1053 = vadd.xlane.f32.xlu0 %v1052_v19 }
 0x3f9   : > { %v1015_v20 = vpop.xlane.xlu0 %1014 }
 0x3fa   : > { %v1031_v22 = vsub.f32 %v999_v51, %v1015_v20 }
 0x3fc   : > { %v1042_v23 = vmul.f32 1.442695, %v1031_v22 }
 0x3fd   : > { %v1021_v24 = vpop.xlane.xlu1 %1020  ;;  %v1012_v25 = vpop.xlane.xlu0 %1011 }
 0x3fe   : > { %2348 = vpow2.f32 %v1042_v23  ;;  %v1033_v26 = vsub.f32 %v1001_v56, %v1021_v24  ;;  %v1030_v27 = vsub.f32 %v998_v54, %v1012_v25 }
 0x400   : > { %v1046_v28 = vmul.f32 1.442695, %v1033_v26  ;;  %v1040_v29 = vmul.f32 1.442695, %v1030_v27 }
 0x401   : > { %v1018_v30 = vpop.xlane.xlu0 %1017  ;;  %v1027_v31 = vpop.xlane.xlu1 %1026 }
 0x402   : > { %2350 = vpow2.f32 %v1046_v28  ;;  %v1032_v32 = vsub.f32 %v1000_v62, %v1018_v30  ;;  %v1035_v33 = vsub.f32 %v1003_v3, %v1027_v31  ;;  %v1448_v31 = vld [vmem:[%s3043_s5] sm:$0xff] }
 0x403   : > { %2352 = vpow2.f32 %v1040_v29 }
 0x404   : > { %v1044_v34 = vmul.f32 1.442695, %v1032_v32  ;;  %v1050_v35 = vmul.f32 1.442695, %v1035_v33  ;;  %v1449_v32 = vld [vmem:[%s3043_s5 + $0x8] sm:$0xff]  ;;  %v1450_v33 = vld [vmem:[%s3043_s5 + $0x10] sm:$0xff] }
 0x405   : > { %v1024_v36 = vpop.xlane.xlu0 %1023 }
 0x406   : > { %2354 = vpow2.f32 %v1044_v34  ;;  %v1034_v37 = vsub.f32 %v1002_v7, %v1024_v36  ;;  %v2192_v34 = vpack.c.bf16 %v1449_v32, %v1448_v31  ;;  %v1607_v32 = vld [vmem:[%s3047_s9 + $0x68] sm:$0xff] }
 0x407   : > { %2356 = vpow2.f32 %v1050_v35  ;;  %v1451_v35 = vld [vmem:[%s3043_s5 + $0x18] sm:$0xff] }
 0x408   : > { %v2743_v38 = vpop.eup %2348  ;;  %v1048_v39 = vmul.f32 1.442695, %v1034_v37  ;;  %v2196_v36 = vpack.c.bf16 %v1451_v35, %v1450_v33  ;;  %v1452_v37 = vld [vmem:[%s3043_s5 + $0x20] sm:$0xff]  ;;  %v1609_v33 = vld [vmem:[%s3047_s9 + $0x78] sm:$0xff] }
 0x409   : > { %v1061_v40 = vsel %vm647_vm1, %v2743_v38, 0.0  ;;  %v2220_v35 = vpack.c.bf16 %v1609_v33, %v1607_v32  ;;  %v1745_v32 = vld [vmem:[%s3049_s11 + $0x40] sm:$0xff]  ;;  %v1746_v33 = vld [vmem:[%s3049_s11 + $0x48] sm:$0xff] }
 0x40a   : > { %2358 = vpow2.f32 %v1048_v39  ;;  %1062 = vadd.xlane.f32.xlu1 %v1061_v40  ;;  %v1454_v40 = vld [vmem:[%s3043_s5 + $0x30] sm:$0xff] }
 0x40c   : > { %v2351_v41 = vpop.eup %2350 }
 0x40d   : > { %v2353_v42 = vpop.eup %2352  ;;  %v1067_v43 = vsel %vm647_vm1, %v2351_v41, 0.0 }
 0x40e   : > { %1068 = vadd.xlane.f32.xlu1 %v1067_v43  ;;  %v1058_v44 = vsel %vm647_vm1, %v2353_v42, 0.0 }
 0x40f   : > { %1059 = vadd.xlane.f32.xlu0 %v1058_v44 }
 0x410   : > { %v2355_v45 = vpop.eup %2354 }
 0x411   : > { %v2749_v46 = vpop.eup %2356  ;;  %v1064_v47 = vsel %vm647_vm1, %v2355_v45, 0.0 }
 0x412   : > { %v1073_v48 = vsel %vm647_vm1, %v2749_v46, 0.0 }
 0x413   : > { %1074 = vadd.xlane.f32.xlu1 %v1073_v48  ;;  %1065 = vadd.xlane.f32.xlu0 %v1064_v47 }
 0x414   : > { %v2359_v49 = vpop.eup %2358 }
 0x415   : > { %v1070_v50 = vsel %vm647_vm1, %v2359_v49, 0.0 }
 0x417   : > { %1071 = vadd.xlane.f32.xlu0 %v1070_v50 }
 0x424   : > { %2331 = vrot.lane.b32.xlu1 %v2685_v13, %s2461_s0  ;;  %s2465_s0 = smov 16  }
 0x426   : > { %v1057_v51 = vpop.xlane.xlu1 %1056 }
 0x427   : > { %2360 = vrcp.f32 %v1057_v51  ;;  %v1054_v52 = vpop.xlane.xlu0 %1053 }
 0x428   : > { %2336 = vrot.lane.b32.xlu1 %v2685_v13, %s2463_s30  ;;  %2362 = vrcp.f32 %v1054_v52  ;;  %s2467_s30 = smov 48  }
 0x42d   : > { %2326 = vrot.lane.b32.xlu0 %v2685_v13, %s2462_s17  ;;  %s2466_s17 = smov 32  }
 0x431   : > { %v2361_v53 = vpop.eup %2360 }
 0x432   : > { %v2363_v54 = vpop.eup %2362  ;;  %v1085_v56 = vmul.f32 %v2361_v53, %v2345_v16 }
 0x433   : > { %v1084_v55 = vmul.f32 %v2363_v54, %v2347_v17 }
 0x435   : > { %2093 = vmatprep.mubr.msk.f32.mxu0 %vm647_vm1, %v1084_v55 }
 0x436   : > { %2094 = vmatmul.mubr.msk.f32.vlgmr.msra.gmra.mrb[2].mxu0 %vm647_vm1, %v1085_v56 }
 0x497   : > { %v1063_v57 = vpop.xlane.xlu1 %1062 }
 0x49b   : > { %v1069_v58 = vpop.xlane.xlu1 %1068 }
 0x49c   : > { %v1060_v59 = vpop.xlane.xlu0 %1059 }
 0x49d   : > { %2364 = vrcp.f32 %v1060_v59 }
 0x49e   : > { %2366 = vrcp.f32 %v1063_v57 }
 0x49f   : > { %2368 = vrcp.f32 %v1069_v58 }
 0x4a0   : > { %v1075_v62 = vpop.xlane.xlu1 %1074  ;;  %v1066_v63 = vpop.xlane.xlu0 %1065 }
 0x4a1   : > { %2370 = vrcp.f32 %v1066_v63  ;;  %v1966_v63 = vld [vmem:[%s3044_s6] ss:$0 sm:$0xff] }
 0x4a4   : > { %v2332_v3 = vpop.permute.xlu1 %2331  ;;  %v1072_v4 = vpop.xlane.xlu0 %1071 }
 0x4a5   : > { %v2334_v13 = vunpack.i.h.bf16 %v2332_v3  ;;  %v2333_v5 = vunpack.i.l.bf16 %v2332_v3  ;;  %2372 = vrcp.f32 %v1072_v4 }
 0x4a6   : > { %2374 = vrcp.f32 %v1075_v62 }
 0x4a7   : > { %v2365_v6 = vpop.eup %2364  ;;  %v2184_v7 = vpack.c.bf16 %v2334_v13, %v2333_v5 }
 0x4a8   : > { %v2337_v8 = vpop.permute.xlu1 %2336  ;;  %v2327_v9 = vpop.permute.xlu0 %2326  ;;  %v1086_v10 = vmul.f32 %v2365_v6, %v2353_v42 }
 0x4a9   : > { %v2339_v11 = vunpack.i.h.bf16 %v2337_v8  ;;  %v2338_v12 = vunpack.i.l.bf16 %v2337_v8  ;;  %v2329_v14 = vunpack.i.h.bf16 %v2327_v9  ;;  %v2328_v15 = vunpack.i.l.bf16 %v2327_v9  ;;  %2185 = vmatprep.subr.bf16.mxu0 %v2184_v7  ;;  %v2367_v16 = vpop.eup %2366 }
 0x4aa   : > { %2100 = vmatprep.mubr.msk.f32.mxu1 %vm647_vm1, %v1086_v10  ;;  %2187 = vmatpush3.bf16.msra.mxu0 %v2184_v7  ;;  %v2369_v17 = vpop.eup %2368  ;;  %v1087_v25 = vmul.f32 %v2367_v16, %v2743_v38  ;;  %v1453_v38 = vld [vmem:[%s3043_s5 + $0x28] sm:$0xff]  ;;  %v1594_v16 = vld [vmem:[%s3047_s9] sm:$0xff] }
 0x4ab   : > { %v2180_v18 = vpack.c.bf16 %v2329_v14, %v2328_v15  ;;  %v2371_v19 = vpop.eup %2370  ;;  %v2188_v20 = vpack.c.bf16 %v2339_v11, %v2338_v12  ;;  %v1089_v23 = vmul.f32 %v2369_v17, %v2351_v41  ;;  %2193 = vmatprep.subr.bf16.mxu0 %v2192_v34  ;;  %v2200_v39 = vpack.c.bf16 %v1453_v38, %v1452_v37  ;;  %v1455_v41 = vld [vmem:[%s3043_s5 + $0x38] sm:$0xff]  ;;  %v1595_v12 = vld [vmem:[%s3047_s9 + $0x8] sm:$0xff]  ;;  %v1596_v17 = vld [vmem:[%s3047_s9 + $0x10] sm:$0xff] }
 0x4ac   : > { %v1088_v22 = vmul.f32 %v2371_v19, %v2355_v45  ;;  %v2204_v42 = vpack.c.bf16 %v1455_v41, %v1454_v40  ;;  %v1597_v14 = vld [vmem:[%s3047_s9 + $0x18] sm:$0xff]  ;;  %v1599_v19 = vld [vmem:[%s3047_s9 + $0x28] sm:$0xff] }
 0x4ad   : > { %2181 = vmatprep.subr.bf16.mxu1 %v2180_v18  ;;  %v2208_v15 = vpack.c.bf16 %v1597_v14, %v1595_v12  ;;  %v1739_v12 = vld [vmem:[%s3049_s11 + $0x10] sm:$0xff]  ;;  %v1740_v14 = vld [vmem:[%s3049_s11 + $0x18] sm:$0xff] }
 0x4ae   : > { %2183 = vmatpush3.bf16.msra.mxu1 %v2180_v18  ;;  %2107 = vmatprep.mubr.msk.f32.mxu0 %vm647_vm1, %v1088_v22  ;;  %v2210_v18 = vpack.c.bf16 %v1596_v17, %v1594_v16  ;;  %v1757_v16 = vld [vmem:[%s3049_s11 + $0xa0] sm:$0xff]  ;;  %v1758_v17 = vld [vmem:[%s3049_s11 + $0xa8] sm:$0xff] }
 0x4af   : > { %v2373_v24 = vpop.eup %2372  ;;  %2189 = vmatprep.subr.bf16.mxu1 %v2188_v20  ;;  %2108 = vmatmul.mubr.msk.f32.vlgmr.msra.gmra.mrb[4].mxu0 %vm647_vm1, %v1089_v23  ;;  %v1598_v23 = vld [vmem:[%s3047_s9 + $0x20] sm:$0xff] }
 0x4b0   : > { %v2375_v26 = vpop.eup %2374  ;;  %v1090_v27 = vmul.f32 %v2373_v24, %v2359_v49  ;;  %2195 = vmatpush3.bf16.msra.mxu0 %v2192_v34  ;;  %v1600_v24 = vld [vmem:[%s3047_s9 + $0x30] sm:$0xff]  ;;  %v1606_v34 = vld [vmem:[%s3047_s9 + $0x60] sm:$0xff] }
 0x4b1   : > { %2101 = vmatmul.mubr.msk.f32.vlgmr.msra.gmra.mrb[10].mxu1 %vm647_vm1, %v1087_v25  ;;  %v1091_v28 = vmul.f32 %v2375_v26, %v2749_v46  ;;  %2197 = vmatprep.subr.bf16.mxu0 %v2196_v36  ;;  %v2214_v25 = vpack.c.bf16 %v1600_v24, %v1598_v23  ;;  %v1603_v26 = vld [vmem:[%s3047_s9 + $0x48] sm:$0xff]  ;;  %v1759_v23 = vld [vmem:[%s3049_s11 + $0xb0] sm:$0xff]  ;;  %v1760_v24 = vld [vmem:[%s3049_s11 + $0xb8] sm:$0xff] }
 0x4b2   : > { %2191 = vmatpush3.bf16.msra.mxu1 %v2188_v20  ;;  %2114 = vmatprep.mubr.msk.f32.mxu1 %vm647_vm1, %v1090_v27  ;;  %v1601_v20 = vld [vmem:[%s3047_s9 + $0x38] sm:$0xff] }
 0x4b3   : > { %2209 = vmatprep.subr.bf16.mxu1 %v2208_v15  ;;  %v2212_v22 = vpack.c.bf16 %v1601_v20, %v1599_v19  ;;  %v1605_v27 = vld [vmem:[%s3047_s9 + $0x58] sm:$0xff]  ;;  %v2230_v15 = vpack.c.bf16 %v1740_v14, %v1739_v12  ;;  %v1741_v19 = vld [vmem:[%s3049_s11 + $0x20] sm:$0xff]  ;;  %v1742_v20 = vld [vmem:[%s3049_s11 + $0x28] sm:$0xff] }
 0x4b4   : > { %2199 = vmatpush3.bf16.msra.mxu0 %v2196_v36  ;;  %v1608_v36 = vld [vmem:[%s3047_s9 + $0x70] sm:$0xff] }
 0x4b5   : > { %2115 = vmatmul.mubr.msk.f32.vlgmr.msra.gmra.mrb[12].mxu1 %vm647_vm1, %v1091_v28  ;;  %2201 = vmatprep.subr.bf16.mxu0 %v2200_v39  ;;  %v2216_v28 = vpack.c.bf16 %v1605_v27, %v1603_v26  ;;  %v2222_v37 = vpack.c.bf16 %v1608_v36, %v1606_v34  ;;  %v1743_v26 = vld [vmem:[%s3049_s11 + $0x30] sm:$0xff]  ;;  %v1744_v27 = vld [vmem:[%s3049_s11 + $0x38] sm:$0xff]  ;;  %v2242_v34 = vpack.c.bf16 %v1746_v33, %v1745_v32 }
 0x4b6   : > { %1692 = vmatprep.mubr.f32.mxu1 %v2460_v21  ;;  %2211 = vmatpush1.bf16.msra.mxu1 %v2210_v18  ;;  %v2232_v18 = vpack.c.bf16 %v1758_v17, %v1757_v16  ;;  %v1764_v36 = vld [vmem:[%s3049_s11 + $0xd8] sm:$0xff] }
 0x4b7   : > { %2213 = vmatprep.subr.bf16.mxu1 %v2212_v22  ;;  %v2234_v22 = vpack.c.bf16 %v1742_v20, %v1741_v19 }
 0x4b8   : > { %2203 = vmatpush3.bf16.msra.mxu0 %v2200_v39 }
 0x4b9   : > { %2205 = vmatprep.subr.bf16.mxu0 %v2204_v42 }
 0x4ba   : > { %2215 = vmatpush1.bf16.msra.mxu1 %v2214_v25  ;;  %v2236_v25 = vpack.c.bf16 %v1760_v24, %v1759_v23 }
 0x4bb   : > { %2217 = vmatprep.subr.bf16.mxu1 %v2216_v28  ;;  %v2238_v28 = vpack.c.bf16 %v1744_v27, %v1743_v26 }
 0x4bc   : > { %2207 = vmatpush3.bf16.msra.mxu0 %v2204_v42 }
 0x509   : > { %v2095_v29 = vpop.f32.mrb[2].mxu0 }
 0x50a   : > { %v1164_v30 = vpop.f32.mrb[3].mxu0 }
 0x582   : > { %v2109_v43 = vpop.f32.mrb[4].mxu0 }
 0x583   : > { %v1326_v44 = vpop.f32.mrb[5].mxu0 }
 0x584   : > { %v2102_v45 = vpop.f32.mrb[10].mxu1 }
 0x585   : > { %1420 = vrot.lane.b32.xlu0 %v2102_v45, %s2465_s0  ;;  %v1245_v46 = vpop.f32.mrb[11].mxu1 }
 0x586   : > { %1418 = vrot.lane.b32.xlu1 %v1245_v46, %s2465_s0  ;;  %s1935_s0 = sshll.u32 %s431_s22, 4 }
 0x588   : > { %v2116_v47 = vpop.f32.mrb[12].mxu1 }
 0x589   : > { %1428 = vrot.lane.b32.xlu0 %v2109_v43, %s2466_s17  ;;  %v1407_v48 = vpop.f32.mrb[13].mxu1 }
 0x58a   : > { %1426 = vrot.lane.b32.xlu1 %v1326_v44, %s2466_s17  ;;  %s1980_s17 = sshll.u32 %s2562_s29, 8  ;;  %s2997_s29 = scalar_lea.sflag [#allocation3], %s431_s22 }
 0x58b   : > { %s2991_s21 = scalar_lea.hbm %s3051_s13, %s1980_s17 }
 0x58d   : > { %1436 = vrot.lane.b32.xlu0 %v2116_v47, %s2467_s30 }
 0x58e   : > { %1434 = vrot.lane.b32.xlu1 %v1407_v48, %s2467_s30  ;;  %s433_s30 = scalar_lea.vmem [#allocation2], %s1935_s0  ;;  %s2400_s0 = sshll.u32 %s2468_s24, 4  ;;  %s2401_s0 = int_to_ptr.vmem [resolvable:$false] %s2400_s0 }
 0x58f   : > { %s1869_s15 = sshll.u32 %s433_s30, 4  ;;  %s2402_s17 = scalar_lea.vmem %s2401_s0, 512  ;;  %s2993_s15 = int_to_ptr.vmem [resolvable:$true] %s1869_s15 }
 0x590   : > { %s2396_s23 = scalar_lea.vmem %s2993_s15, 256  ;;  %p2403_p0 = scmp.lt.s32.totalorder %s2993_s15, %s2401_s0 }
 0x591   : > { %p2397_p11 = scmp.ne.s32.totalorder %s2993_s15, %s2396_s23  ;;  %p2404_p1 = scmp.lt.s32.totalorder %s2402_s17, %s2396_s23 }
 0x593   : > { %p2398_p12 = pnand %p2397_p11, %p2579_p5  ;;  %p2405_p2 = por %p2404_p1, %p2403_p0 }
 0x595   : > { %p2399_p13 = pneg %p2398_p12 }
 0x597   : > { %p2406_p3 = pnand %p2405_p2, %p2399_p13 }
 0x5f7   : > { %v1421_v49 = vpop.permute.xlu0 %1420 }
 0x5f8   : > { %v1419_v50 = vpop.permute.xlu1 %1418  ;;  %v1441_v55 = vsel %vm647_vm1, %v2095_v29, %v1421_v49  ;;  %v1602_v29 = vld [vmem:[%s3047_s9 + $0x40] sm:$0xff] }
 0x5f9   : > { %v1440_v53 = vsel %vm647_vm1, %v1164_v30, %v1419_v50  ;;  %v1604_v30 = vld [vmem:[%s3047_s9 + $0x50] sm:$0xff] }
 0x5fa   : > { %v2218_v31 = vpack.c.bf16 %v1604_v30, %v1602_v29  ;;  %v1761_v29 = vld [vmem:[%s3049_s11 + $0xc0] sm:$0xff]  ;;  %v1762_v30 = vld [vmem:[%s3049_s11 + $0xc8] sm:$0xff] }
 0x5fb   : > { %v1429_v51 = vpop.permute.xlu0 %1428 }
 0x5fc   : > { %v1427_v52 = vpop.permute.xlu1 %1426  ;;  %v1444_v58 = vsel %vm1442_vm5, %v1441_v55, %v1429_v51  ;;  %2219 = vmatpush1.bf16.msra.mxu1 %v2218_v31  ;;  %v2240_v31 = vpack.c.bf16 %v1762_v30, %v1761_v29 }
 0x5fd   : > { %v1443_v56 = vsel %vm1442_vm5, %v1440_v53, %v1427_v52  ;;  %2221 = vmatprep.subr.bf16.mxu1 %v2220_v35  ;;  %v1763_v35 = vld [vmem:[%s3049_s11 + $0xd0] sm:$0xff] }
 0x5ff   : > { %v1437_v54 = vpop.permute.xlu0 %1436 }
 0x600   : > { %v1435_v57 = vpop.permute.xlu1 %1434  ;;  %v1447_v62 = vsel %vm1445_vm6, %v1444_v58, %v1437_v54  ;;  %2223 = vmatpush1.bf16.msra.mxu1 %v2222_v37  ;;  %v1969_v54 = vld [vmem:[%s3045_s7] ss:$0 sm:$0xff]  ;;  %v2244_v37 = vpack.c.bf16 %v1764_v36, %v1763_v35 }
 0x601   : > { %v1446_v59 = vsel %vm1445_vm6, %v1443_v56, %v1435_v57  ;;  %v1970_v56 = vld [vmem:[%s3046_s8] ss:$0 sm:$0xff] }
 0x602   : > { %2133 = vmatprep.mubr.msk.f32.mxu0 %vm441_vm0, %v1446_v59 }
 0x603   : > { %2134 = vmatmul.mubr.msk.f32.vlgmr.msra.gmra.mrb[6].mxu0 %vm441_vm0, %v1447_v62 }
 0x6d6   : > { %v2135_v3 = vpop.f32.mrb[6].mxu0 }
 0x6d7   : > { %v1541_v4 = vadd.f32 %v2135_v3, %v1966_v63  ;;  %v1535_v13 = vpop.f32.mrb[7].mxu0 }
 0x6d8   : > { %v1536_v5 = vadd.f32 %v1966_v63, %v1535_v13  ;;  %v1753_v13 = vld [vmem:[%s3049_s11 + $0x80] sm:$0xff] }
 0x6d9   : > { %v2804_v6 = vadd.f32 %v1541_v4, %v2594_v0 }
 0x6da   : > { %v2807_v7 = vadd.f32 %v1536_v5, %v2596_v1  ;;  %v1754_v5 = vld [vmem:[%s3049_s11 + $0x88] sm:$0xff] }
 0x6db   : > { %v1549_v8 = vsel %vm441_vm0, %v2804_v6, 0.0  ;;  %v1555_v0 = vmul.f32 %v2804_v6, %v2804_v6 }
 0x6dc   : > { %1550 = vadd.xlane.f32.xlu0 %v1549_v8  ;;  %v1546_v9 = vsel %vm441_vm0, %v2807_v7, 0.0  ;;  %v1554_v10 = vmul.f32 %v2807_v7, %v2807_v7  ;;  %v2224_v8 = vpack.c.bf16 %v1754_v5, %v1753_v13 }
 0x6dd   : > { %1547 = vadd.xlane.f32.xlu1 %v1546_v9  ;;  %v1559_v1 = vsel %vm441_vm0, %v1555_v0, 0.0  ;;  %v1737_v9 = vld [vmem:[%s3049_s11] sm:$0xff]  ;;  %v1756_v0 = vld [vmem:[%s3049_s11 + $0x98] sm:$0xff] }
 0x6de   : > { %v1556_v11 = vsel %vm441_vm0, %v1554_v10, 0.0  ;;  %2225 = vmatprep.subr.bf16.mxu0 %v2224_v8 }
 0x6e0   : > { %1557 = vadd.xlane.f32.xlu0 %v1556_v11  ;;  %v1755_v11 = vld [vmem:[%s3049_s11 + $0x90] sm:$0xff] }
 0x6e4   : > { %1560 = vadd.xlane.f32.xlu0 %v1559_v1  ;;  %v2228_v1 = vpack.c.bf16 %v1756_v0, %v1755_v11 }
 0x769   : > { %v1551_v38 = vpop.xlane.xlu0 %1550 }
 0x76a   : > { %v1548_v39 = vpop.xlane.xlu1 %1547  ;;  %v1553_v43 = vmul.f32 0.015625, %v1551_v38  ;;  %v1747_v38 = vld [vmem:[%s3049_s11 + $0x50] sm:$0xff] }
 0x76b   : > { %v1552_v40 = vmul.f32 0.015625, %v1548_v39  ;;  %v1748_v39 = vld [vmem:[%s3049_s11 + $0x58] sm:$0xff] }
 0x76c   : > { %v1565_v47 = vmul.f32 %v1553_v43, %v1553_v43  ;;  %v1569_v57 = vsub.f32 %v2804_v6, %v1553_v43 }
 0x76d   : > { %v1564_v41 = vmul.f32 %v1552_v40, %v1552_v40  ;;  %v1558_v42 = vpop.xlane.xlu0 %1557  ;;  %v1568_v52 = vsub.f32 %v2807_v7, %v1552_v40  ;;  %v2246_v40 = vpack.c.bf16 %v1748_v39, %v1747_v38 }
 0x76e   : > { %v1562_v44 = vmul.f32 0.015625, %v1558_v42  ;;  %v1766_v42 = vld [vmem:[%s3049_s11 + $0xe8] sm:$0xff] }
 0x770   : > { %v1566_v45 = vsub.f32 %v1562_v44, %v1564_v41  ;;  %v1765_v41 = vld [vmem:[%s3049_s11 + $0xe0] sm:$0xff] }
 0x771   : > { %v1561_v46 = vpop.xlane.xlu0 %1560  ;;  %v2248_v43 = vpack.c.bf16 %v1766_v42, %v1765_v41  ;;  %v1749_v44 = vld [vmem:[%s3049_s11 + $0x60] sm:$0xff] }
 0x772   : > { %v1570_v48 = vadd.f32 1e-05, %v1566_v45  ;;  %v1563_v49 = vmul.f32 0.015625, %v1561_v46  ;;  %v1750_v45 = vld [vmem:[%s3049_s11 + $0x68] sm:$0xff] }
 0x773   : > { %v2250_v46 = vpack.c.bf16 %v1750_v45, %v1749_v44 }
 0x774   : > { %2376 = vrsqrt.f32 %v1570_v48  ;;  %v1567_v50 = vsub.f32 %v1563_v49, %v1565_v47  ;;  %v1767_v47 = vld [vmem:[%s3049_s11 + $0xf0] sm:$0xff]  ;;  %v1768_v48 = vld [vmem:[%s3049_s11 + $0xf8] sm:$0xff] }
 0x775   : > { %v2252_v49 = vpack.c.bf16 %v1768_v48, %v1767_v47 }
 0x776   : > { %v1571_v51 = vadd.f32 1e-05, %v1567_v50  ;;  %v1751_v50 = vld [vmem:[%s3049_s11 + $0x70] sm:$0xff] }
 0x778   : > { %2378 = vrsqrt.f32 %v1571_v51  ;;  %v1752_v51 = vld [vmem:[%s3049_s11 + $0x78] sm:$0xff] }
 0x77e   : > { %v2377_v53 = vpop.eup %2376 }
 0x77f   : > { %v1574_v55 = vmul.f32 %v2377_v53, %v1568_v52  ;;  %v2254_v52 = vpack.c.bf16 %v1752_v51, %v1751_v50  ;;  %v1610_v53 = vld [vmem:[%s3048_s10] sm:$0x3] }
 0x781   : > { %v1583_v58 = vmul.f32 %v1969_v54, %v1574_v55  ;;  %v1619_v55 = vrot.slane %v1610_v53, %v515_v2 }
 0x782   : > { %v2379_v59 = vpop.eup %2378 }
 0x783   : > { %v1592_v62 = vadd.f32 %v1970_v56, %v1583_v58  ;;  %v1575_v63 = vmul.f32 %v2379_v59, %v1569_v57 }
 0x785   : > { %1971 = vmatmul.mubr.msk.f32.vlgmr.msra.gmra.mrb[14].mxu1 %vm441_vm0, %v1592_v62  ;;  %v1584_v3 = vmul.f32 %v1969_v54, %v1575_v63  ;;  %v1615_v54 = vrot.slane %v1610_v53, %v511_v61 }
 0x786   : > { %1698 = vmatprep.mubr.f32.mxu1 %v2460_v21  ;;  %v1738_v21 = vld [vmem:[%s3049_s11 + $0x8] sm:$0xff] }
 0x787   : > { %v1593_v4 = vadd.f32 %v1970_v56, %v1584_v3  ;;  %v2226_v10 = vpack.c.bf16 %v1738_v21, %v1737_v9 }
 0x789   : > { %1972 = vmatmul.mubr.msk.f32.gmra.mrb[16].mxu1 %vm441_vm0, %v1593_v4  ;;  %2227 = vmatpush3.bf16.msra.mxu0 %v2226_v10 }
 0x78a   : > { %2229 = vmatprep.subr.bf16.mxu0 %v2228_v1 }
 0x78d   : > { %2231 = vmatpush3.bf16.msra.mxu0 %v2230_v15 }
 0x78e   : > { %2233 = vmatprep.subr.bf16.mxu0 %v2232_v18 }
 0x791   : > { %2235 = vmatpush3.bf16.msra.mxu0 %v2234_v22 }
 0x792   : > { %2237 = vmatprep.subr.bf16.mxu0 %v2236_v25 }
 0x795   : > { %2239 = vmatpush3.bf16.msra.mxu0 %v2238_v28 }
 0x796   : > { %2241 = vmatprep.subr.bf16.mxu0 %v2240_v31  ;;  %v1973_v31 = vld [vmem:[%s3050_s12] ss:$0 sm:$0xff] }
 0x799   : > { %2243 = vmatpush3.bf16.msra.mxu0 %v2242_v34 }
 0x79a   : > { %2245 = vmatprep.subr.bf16.mxu0 %v2244_v37 }
 0x79d   : > { %2247 = vmatpush3.bf16.msra.mxu0 %v2246_v40 }
 0x79e   : > { %2249 = vmatprep.subr.bf16.mxu0 %v2248_v43 }
 0x7a1   : > { %2251 = vmatpush3.bf16.msra.mxu0 %v2250_v46 }
 0x7a2   : > { %2253 = vmatprep.subr.bf16.mxu0 %v2252_v49 }
 0x7a5   : > { %2255 = vmatpush3.bf16.msra.mxu0 %v2254_v52 }
 0x858   : > { %v1694_v56 = vpop.f32.mrb[14].mxu1 }
 0x859   : > { %v1695_v57 = vadd.f32 %v1694_v56, %v1615_v54  ;;  %v1696_v58 = vpop.f32.mrb[15].mxu1 }
 0x85a   : > { %v1697_v59 = vadd.f32 %v1696_v58, %v1619_v55 }
 0x85b   : > { %v1705_v62 = vmul.f32 1.702, %v1695_v57 }
 0x85c   : > { %v1706_v63 = vmul.f32 1.702, %v1697_v59  ;;  %v1700_v3 = vpop.f32.mrb[16].mxu1 }
 0x85d   : > { %v1709_v4 = vsub.f32 0.0, %v1705_v62  ;;  %v1701_v13 = vadd.f32 %v1700_v3, %v1615_v54  ;;  %v1702_v5 = vpop.f32.mrb[17].mxu1 }
 0x85e   : > { %v1710_v8 = vsub.f32 0.0, %v1706_v63  ;;  %v1703_v9 = vadd.f32 %v1702_v5, %v1619_v55 }
 0x85f   : > { %v1713_v21 = vmul.f32 1.442695, %v1709_v4  ;;  %v1707_v10 = vmul.f32 1.702, %v1701_v13 }
 0x860   : > { %v1715_v11 = vmul.f32 1.442695, %v1710_v8  ;;  %v1708_v0 = vmul.f32 1.702, %v1703_v9 }
 0x861   : > { %2380 = vpow2.f32 %v1713_v21  ;;  %v1711_v61 = vsub.f32 0.0, %v1707_v10 }
 0x862   : > { %2382 = vpow2.f32 %v1715_v11  ;;  %v1712_v60 = vsub.f32 0.0, %v1708_v0 }
 0x863   : > { %v1717_v2 = vmul.f32 1.442695, %v1711_v61 }
 0x864   : > { %v1719_v1 = vmul.f32 1.442695, %v1712_v60 }
 0x865   : > { %2384 = vpow2.f32 %v1717_v2 }
 0x866   : > { %2386 = vpow2.f32 %v1719_v1 }
 0x86b   : > { %v2381_v12 = vpop.eup %2380 }
 0x86c   : > { %v2383_v14 = vpop.eup %2382  ;;  %v1721_v15 = vadd.f32 1.0, %v2381_v12 }
 0x86d   : > { %v1722_v16 = vadd.f32 1.0, %v2383_v14 }
 0x86e   : > { %2388 = vrcp.f32 %v1721_v15 }
 0x86f   : > { %v2385_v17 = vpop.eup %2384  ;;  %2390 = vrcp.f32 %v1722_v16 }
 0x870   : > { %v2387_v18 = vpop.eup %2386  ;;  %v1723_v19 = vadd.f32 1.0, %v2385_v17 }
 0x871   : > { %v1724_v20 = vadd.f32 1.0, %v2387_v18 }
 0x872   : > { %2392 = vrcp.f32 %v1723_v19 }
 0x873   : > { %2394 = vrcp.f32 %v1724_v20 }
 0x878   : > { %v2389_v22 = vpop.eup %2388 }
 0x879   : > { %v2391_v23 = vpop.eup %2390  ;;  %v1733_v25 = vmul.f32 %v2389_v22, %v1695_v57 }
 0x87a   : > { %v1734_v24 = vmul.f32 %v2391_v23, %v1697_v59 }
 0x87c   : > { %v2393_v26 = vpop.eup %2392  ;;  %1840 = vmatprep.mubr.f32.mxu0 %v1734_v24 }
 0x87d   : > { %v2395_v27 = vpop.eup %2394  ;;  %1841 = vmatmul.mubr.f32.vlgmr.msra.gmra.mrb[8].mxu0 %v1733_v25  ;;  %v1735_v29 = vmul.f32 %v2393_v26, %v1701_v13 }
 0x87e   : > { %v1736_v28 = vmul.f32 %v2395_v27, %v1703_v9 }
 0x880   : > { %1845 = vmatprep.mubr.f32.mxu0 %v1736_v28 }
 0x881   : > { %1846 = vmatmul.mubr.f32.gmra.mrb[10].mxu0 %v1735_v29 }
 0x950   : > { %v2055_v30 = vpop.f32.mrb[8].mxu0 }
 0x951   : > { %v2056_v32 = vpop.f32.mrb[9].mxu0 }
 0x952   : > { %v2057_v33 = vadd.f32 %v2056_v32, %v2055_v30 }
 0x954   : > { %v1843_v34 = vadd.f32 %v2057_v33, %v1973_v31  ;;  %v2058_v35 = vpop.f32.mrb[10].mxu0 }
 0x955   : > { %v2059_v36 = vpop.f32.mrb[11].mxu0 }
 0x956   : > { %v1851_v37 = vadd.f32 %v1843_v34, %v2807_v7  ;;  %v2060_v38 = vadd.f32 %v2059_v36, %v2058_v35 }
 0x958   : > { %1853 = vst.msk [vmem:[%s433_s30] sm:$0xff] %vm441_vm0, %v1851_v37  ;;  %v1848_v39 = vadd.f32 %v2060_v38, %v1973_v31 }
 0x95a   : > { %v1852_v40 = vadd.f32 %v1848_v39, %v2804_v6 }
 0x95c   : > { %1854 = vst.msk [vmem:[%s433_s30 + $0x8] sm:$0xff] %vm441_vm0, %v1852_v40 }
 0x95d   : > { %2409 = shalt.err (!%p2406_p3)
}
 0x95e   : > { %s2410_s22 = scalar_lea.hbm %s2991_s21, 256  ;;  %s2414_s20 = scalar_lea.hbm %s3051_s13, 512 }
 0x95f   : > { %p2411_p4 = scmp.ne.s32.totalorder %s2991_s21, %s2410_s22  ;;  %p2415_p9 = scmp.lt.u32.totalorder %s2991_s21, %s3051_s13 }
 0x960   : > { %p2416_p10 = scmp.lt.u32.totalorder %s2414_s20, %s2410_s22  ;;  %p2418_p12 = scmp.lt.u32.totalorder %s2410_s22, %s2991_s21 }
 0x961   : > { %p2412_p7 = pnand %p2411_p4, %p2579_p5 }
 0x962   : > { %p2417_p11 = por %p2416_p10, %p2415_p9 }
 0x963   : > { %p2413_p8 = pneg %p2412_p7 }
 0x964   : > { %p2419_p13 = por %p2418_p12, %p2417_p11 }
 0x966   : > { %p2420_p0 = pnand %p2419_p13, %p2413_p8 }
 0x968   : > { %2423 = shalt.err (!%p2420_p0)
}
 0x969   : > { %s2469_s23 = smov 128   ;;  %s2470_s17 = smov 8  }
 0x96a   : > { %2256 = dma.vmem_to_hbm [thread:$0]  (%p2579_p5), %s2993_s15, 256, %s2991_s21, %s2997_s29, %s2469_s23, %s2469_s23, %s2470_s17  }
 0x96b PF: > { %p2262_p1 = scmp.ge.s32.totalorder %s2458_s28, 2  ;;  %s1884_s30 = sand.u32 1, %s2446_s25  }
 0x96c   : > { %s1885_s22 = scalar_lea.sflag [#allocation3], %s1884_s30 }
 0x96d   : > { %p2259_p2 = pnand %p2262_p1, %p2583_p6 }
 0x96f   : > { %2441 = dma.done.wait (!%p2259_p2), %s1885_s22, 256  }
 0x970   : > { %2443 = vsyncadd (!%p2259_p2), %s1885_s22, 4294967040  ;;  %s3059_s16 = sld [smem:[#allocation5_spill]]  ;;  %p23_p3 = scmp.ge.s32.totalorder %s2566_s14, 4  }
 0x971   : > { %s3060_s25 = smov %s2450_s26  ;;  %s3061_s26 = smov %s2454_s27 }
 0x972   : > { %s3063_s28 = smov %s2566_s14  ;;  %25 = sbr.rel (!%p23_p3) target bundleno = 5 (0x5), region = 107 }
 0x976   : > { %s3062_s27 = smov %s3059_s16 }
 0x979   :  { %1890 = vsyncpa [#allocation3], 1 }
 0x97a   :  { %1892 = vsyncpa [#allocation3 + $0x1], 1 }

</bundles_post_ra>
